<compile_context>
chip_gen: v7x
topology: tpu7x:2x2x1
jax: 0.10.0
libtpu: 0.0.40
codegen_flags: <defaults>
</compile_context>

<pallas_src>
import functools

import jax
import jax.numpy as jnp
from jax.experimental import pallas as pl
from jax.experimental.pallas import tpu as pltpu

EMB_DIM = 200                    # emb_dim used by GNN_node(3, 200, ...)
MLP_HIDDEN = 2 * EMB_DIM         # 400
NUM_LAYERS = 3                   # layers per GNN_node
NUM_TOTAL_LAYERS = 2 * NUM_LAYERS  # conv1 + conv2 fused

# Lane-friendly padded dims (multiples of 128)
D_PAD = 256
H_PAD = 512


def _encoder_kernel(a_ref, x_ref, w1_ref, b1_ref, w2_ref, b2_ref,
                    o_ref, h_ref):
    """One grid step == one fused GIN layer.

    h_ref (VMEM scratch) carries the activation across all 6 layers; the
    adjacency / input blocks are VMEM-resident (constant block index), the
    per-layer weights are pipelined in by their BlockSpecs, and only the
    last layer writes the output block.
    """
    layer = pl.program_id(0)
    last = pl.num_programs(0) - 1

    @pl.when(layer == 0)
    def _():
        h_ref[...] = x_ref[...]

    x = h_ref[...]                                              # (N, D_PAD)

    # GIN 'sum' aggregation with eps == 0:  agg = x + A @ x     (MXU)
    agg = x + jnp.dot(a_ref[...], x, preferred_element_type=jnp.float32)

    # MLP: Linear(D,H) -> ReLU -> Linear(H,D)                   (MXU)
    h = jnp.dot(agg, w1_ref[0], preferred_element_type=jnp.float32) + b1_ref[0]
    h = jnp.maximum(h, 0.0)
    out = jnp.dot(h, w2_ref[0], preferred_element_type=jnp.float32) + b2_ref[0]

    # ReLU after every layer except the very last one:
    #   conv1 inner layers 0,1 -> relu; layer 2 -> Encoder-level F.relu;
    #   conv2 inner layers 3,4 -> relu; layer 5 -> no relu.
    out = jnp.where(layer < last, jnp.maximum(out, 0.0), out)

    h_ref[...] = out

    @pl.when(layer == last)
    def _():
        o_ref[...] = out.astype(o_ref.dtype)


def encoder_forward(x, edge_index, params_conv1, params_conv2):
    n, d = x.shape
    assert d == EMB_DIM

    # Dense adjacency for 'sum' message passing: A[target, source] += 1
    src, dst = edge_index[0], edge_index[1]
    adj = jnp.zeros((n, n), jnp.float32).at[dst, src].add(1.0)

    # Zero-pad features and stack/pad per-layer weights (lane-dense dims).
    x_p = jnp.pad(x, ((0, 0), (0, D_PAD - EMB_DIM)))
    w1s, b1s, w2s, b2s = [], [], [], []
    for (w1, b1, w2, b2) in list(params_conv1) + list(params_conv2):
        w1s.append(jnp.pad(w1, ((0, D_PAD - EMB_DIM), (0, H_PAD - MLP_HIDDEN))))
        b1s.append(jnp.pad(b1.reshape(1, -1), ((0, 0), (0, H_PAD - MLP_HIDDEN))))
        w2s.append(jnp.pad(w2, ((0, H_PAD - MLP_HIDDEN), (0, D_PAD - EMB_DIM))))
        b2s.append(jnp.pad(b2.reshape(1, -1), ((0, 0), (0, D_PAD - EMB_DIM))))
    w1_all = jnp.stack(w1s)   # (6, D_PAD, H_PAD)
    b1_all = jnp.stack(b1s)   # (6, 1, H_PAD)
    w2_all = jnp.stack(w2s)   # (6, H_PAD, D_PAD)
    b2_all = jnp.stack(b2s)   # (6, 1, D_PAD)

    out_p = pl.pallas_call(
        _encoder_kernel,
        out_shape=jax.ShapeDtypeStruct((n, D_PAD), jnp.float32),
        grid=(NUM_TOTAL_LAYERS,),
        in_specs=[
            pl.BlockSpec((n, n), lambda l: (0, 0)),               # adjacency
            pl.BlockSpec((n, D_PAD), lambda l: (0, 0)),           # input X
            pl.BlockSpec((1, D_PAD, H_PAD), lambda l: (l, 0, 0)),  # W1[layer]
            pl.BlockSpec((1, 1, H_PAD), lambda l: (l, 0, 0)),      # b1[layer]
            pl.BlockSpec((1, H_PAD, D_PAD), lambda l: (l, 0, 0)),  # W2[layer]
            pl.BlockSpec((1, 1, D_PAD), lambda l: (l, 0, 0)),      # b2[layer]
        ],
        out_specs=pl.BlockSpec((n, D_PAD), lambda l: (0, 0)),
        scratch_shapes=[pltpu.VMEM((n, D_PAD), jnp.float32)],      # activation
        compiler_params=pltpu.CompilerParams(
            dimension_semantics=("arbitrary",)),                   # layers are sequential
    )(adj, x_p, w1_all, b1_all, w2_all, b2_all)

    return out_p[:, :EMB_DIM]


def encoder_reference(x, edge_index, params_conv1, params_conv2):
    """Pure-JAX reference (dense adjacency, f32 highest precision)."""
    n = x.shape[0]
    src, dst = edge_index[0], edge_index[1]
    adj = jnp.zeros((n, n), jnp.float32).at[dst, src].add(1.0)

    def gin_stack(h, params, final_relu):
        for li, (w1, b1, w2, b2) in enumerate(params):
            agg = h + jnp.dot(adj, h, precision=jax.lax.Precision.HIGHEST)
            hid = jnp.maximum(
                jnp.dot(agg, w1, precision=jax.lax.Precision.HIGHEST) + b1, 0.0)
            out = jnp.dot(hid, w2, precision=jax.lax.Precision.HIGHEST) + b2
            if li < len(params) - 1 or final_relu:
                out = jnp.maximum(out, 0.0)
            h = out
        return h

    h = gin_stack(x, params_conv1, final_relu=True)
    return gin_stack(h, params_conv2, final_relu=False)


def init_gnn_params(key):
    """3 GIN layers: Linear(200,400) and Linear(400,200), scaled-normal
    weights and small random biases (deterministic)."""
    params = []
    for _ in range(NUM_LAYERS):
        key, k1, k2, k3, k4 = jax.random.split(key, 5)
        w1 = jax.random.normal(k1, (EMB_DIM, MLP_HIDDEN), jnp.float32) / jnp.sqrt(EMB_DIM)
        b1 = 0.01 * jax.random.normal(k3, (MLP_HIDDEN,), jnp.float32)
        w2 = jax.random.normal(k2, (MLP_HIDDEN, EMB_DIM), jnp.float32) / jnp.sqrt(MLP_HIDDEN)
        b2 = 0.01 * jax.random.normal(k4, (EMB_DIM,), jnp.float32)
        params.append((w1, b1, w2, b2))
    return params, key


if __name__ == "__main__":
    key = jax.random.PRNGKey(0)

    # Small synthetic graph: 16 nodes, 40 directed edges, 200-dim features.
    N, E = 16, 40
    key, kx, ke = jax.random.split(key, 3)
    x = jax.random.normal(kx, (N, EMB_DIM), jnp.float32)
    edge_index = jax.random.randint(ke, (2, E), 0, N, dtype=jnp.int32)

    params_conv1, key = init_gnn_params(key)
    params_conv2, key = init_gnn_params(key)

    out = encoder_forward(x, edge_index, params_conv1, params_conv2)
    out = jax.block_until_ready(out)

    assert out.shape == (N, EMB_DIM) and out.dtype == jnp.float32
    assert bool(jnp.all(jnp.isfinite(out)))

    ref = encoder_reference(x, edge_index, params_conv1, params_conv2)
    ref = jax.block_until_ready(ref)
    assert bool(jnp.allclose(out, ref, rtol=2e-2, atol=2e-2)), (
        "Pallas output diverges from JAX reference")

    print("KERNEL_OK")
</pallas_src>

<mosaic_0001>
module attributes {stable_mosaic.version = 11 : i64} {
  func.func @_encoder_kernel(%arg0: i32, %arg1: memref<16x16xf32, #tpu.memory_space<vmem>>, %arg2: memref<16x256xf32, #tpu.memory_space<vmem>>, %arg3: memref<1x256x512xf32, #tpu.memory_space<vmem>>, %arg4: memref<1x1x512xf32, #tpu.memory_space<vmem>>, %arg5: memref<1x512x256xf32, #tpu.memory_space<vmem>>, %arg6: memref<1x1x256xf32, #tpu.memory_space<vmem>>, %arg7: memref<16x256xf32, #tpu.memory_space<vmem>>, %arg8: memref<16x256xf32, #tpu.memory_space<vmem>>) attributes {dimension_semantics = [#tpu.dimension_semantics<arbitrary>], iteration_bounds = array<i64: 6>, scalar_prefetch = 0 : i64, scratch_operands = 1 : i64, tpu.core_type = #tpu.core_type<tc>, window_params = [{pipeline_mode = #tpu.pipeline_mode<synchronous>, transform_indices = @transform_0, window_bounds = array<i64: 16, 16>}, {pipeline_mode = #tpu.pipeline_mode<synchronous>, transform_indices = @transform_1, window_bounds = array<i64: 16, 256>}, {transform_indices = @transform_2, window_bounds = array<i64: 1, 256, 512>}, {transform_indices = @transform_3, window_bounds = array<i64: 1, 1, 512>}, {transform_indices = @transform_4, window_bounds = array<i64: 1, 512, 256>}, {transform_indices = @transform_5, window_bounds = array<i64: 1, 1, 256>}, {pipeline_mode = #tpu.pipeline_mode<synchronous>, transform_indices = @transform_6, window_bounds = array<i64: 16, 256>}]} {
    %c0_i32 = arith.constant 0 : i32
    %0 = arith.cmpi eq, %arg0, %c0_i32 : i32
    %1 = arith.extui %0 : i1 to i32
    %c0_i32_0 = arith.constant 0 : i32
    %2 = arith.cmpi ne, %1, %c0_i32_0 : i32
    scf.if %2 {
      %c0_24 = arith.constant 0 : index
      %c0_25 = arith.constant 0 : index
      %31 = vector.load %arg2[%c0_24, %c0_25] : memref<16x256xf32, #tpu.memory_space<vmem>>, vector<16x256xf32>
      %c0_26 = arith.constant 0 : index
      %c0_27 = arith.constant 0 : index
      %32 = vector.load %arg8[%c0_26, %c0_27] : memref<16x256xf32, #tpu.memory_space<vmem>>, vector<16x256xf32>
      tpu.vector_store %arg8[%c0_26, %c0_27], %31 {strides = array<i32>} : memref<16x256xf32, #tpu.memory_space<vmem>>, vector<16x256xf32>,
    } else {
    }
    %c0 = arith.constant 0 : index
    %c0_1 = arith.constant 0 : index
    %3 = vector.load %arg8[%c0, %c0_1] : memref<16x256xf32, #tpu.memory_space<vmem>>, vector<16x256xf32>
    %c0_2 = arith.constant 0 : index
    %c0_3 = arith.constant 0 : index
    %4 = vector.load %arg1[%c0_2, %c0_3] : memref<16x16xf32, #tpu.memory_space<vmem>>, vector<16x16xf32>
    %cst = arith.constant dense<0.000000e+00> : vector<16x256xf32>
    %5 = tpu.matmul %4, %3, %cst {dimension_numbers = #tpu.dot_dimension_numbers<[1], [0], [0], [1], [0, 0, 1, 1], [], []>} : vector<16x16xf32>, vector<16x256xf32>, vector<16x256xf32> -> vector<16x256xf32>
    %6 = arith.addf %3, %5 : vector<16x256xf32>
    %c0_4 = arith.constant 0 : index
    %c0_5 = arith.constant 0 : index
    %c0_6 = arith.constant 0 : index
    %7 = vector.load %arg3[%c0_4, %c0_5, %c0_6] : memref<1x256x512xf32, #tpu.memory_space<vmem>>, vector<1x256x512xf32>
    %8 = vector.shape_cast %7 : vector<1x256x512xf32> to vector<256x512xf32>
    %cst_7 = arith.constant dense<0.000000e+00> : vector<16x512xf32>
    %9 = tpu.matmul %6, %8, %cst_7 {dimension_numbers = #tpu.dot_dimension_numbers<[1], [0], [0], [1], [0, 0, 1, 1], [], []>} : vector<16x256xf32>, vector<256x512xf32>, vector<16x512xf32> -> vector<16x512xf32>
    %c0_8 = arith.constant 0 : index
    %c0_9 = arith.constant 0 : index
    %c0_10 = arith.constant 0 : index
    %10 = vector.load %arg4[%c0_8, %c0_9, %c0_10] : memref<1x1x512xf32, #tpu.memory_space<vmem>>, vector<1x1x512xf32>
    %11 = vector.shape_cast %10 : vector<1x1x512xf32> to vector<1x512xf32>
    %12 = vector.broadcast %11 : vector<1x512xf32> to vector<16x512xf32>
    %13 = arith.addf %9, %12 : vector<16x512xf32>
    %cst_11 = arith.constant 0.000000e+00 : f32
    %14 = vector.broadcast %cst_11 : f32 to vector<16x512xf32>
    %15 = arith.maximumf %13, %14 : vector<16x512xf32>
    %c0_12 = arith.constant 0 : index
    %c0_13 = arith.constant 0 : index
    %c0_14 = arith.constant 0 : index
    %16 = vector.load %arg5[%c0_12, %c0_13, %c0_14] : memref<1x512x256xf32, #tpu.memory_space<vmem>>, vector<1x512x256xf32>
    %17 = vector.shape_cast %16 : vector<1x512x256xf32> to vector<512x256xf32>
    %cst_15 = arith.constant dense<0.000000e+00> : vector<16x256xf32>
    %18 = tpu.matmul %15, %17, %cst_15 {dimension_numbers = #tpu.dot_dimension_numbers<[1], [0], [0], [1], [0, 0, 1, 1], [], []>} : vector<16x512xf32>, vector<512x256xf32>, vector<16x256xf32> -> vector<16x256xf32>
    %c0_16 = arith.constant 0 : index
    %c0_17 = arith.constant 0 : index
    %c0_18 = arith.constant 0 : index
    %19 = vector.load %arg6[%c0_16, %c0_17, %c0_18] : memref<1x1x256xf32, #tpu.memory_space<vmem>>, vector<1x1x256xf32>
    %20 = vector.shape_cast %19 : vector<1x1x256xf32> to vector<1x256xf32>
    %21 = vector.broadcast %20 : vector<1x256xf32> to vector<16x256xf32>
    %22 = arith.addf %18, %21 : vector<16x256xf32>
    %c5_i32 = arith.constant 5 : i32
    %23 = arith.cmpi slt, %arg0, %c5_i32 : i32
    %cst_19 = arith.constant 0.000000e+00 : f32
    %24 = vector.broadcast %cst_19 : f32 to vector<16x256xf32>
    %25 = arith.maximumf %22, %24 : vector<16x256xf32>
    %26 = arith.select %23, %25, %22 : vector<16x256xf32>
    %c0_20 = arith.constant 0 : index
    %c0_21 = arith.constant 0 : index
    %27 = vector.load %arg8[%c0_20, %c0_21] : memref<16x256xf32, #tpu.memory_space<vmem>>, vector<16x256xf32>
    tpu.vector_store %arg8[%c0_20, %c0_21], %26 {strides = array<i32>} : memref<16x256xf32, #tpu.memory_space<vmem>>, vector<16x256xf32>,
    %c5_i32_22 = arith.constant 5 : i32
    %28 = arith.cmpi eq, %arg0, %c5_i32_22 : i32
    %29 = arith.extui %28 : i1 to i32
    %c0_i32_23 = arith.constant 0 : i32
    %30 = arith.cmpi ne, %29, %c0_i32_23 : i32
    scf.if %30 {
      %c0_24 = arith.constant 0 : index
      %c0_25 = arith.constant 0 : index
      %31 = vector.load %arg7[%c0_24, %c0_25] : memref<16x256xf32, #tpu.memory_space<vmem>>, vector<16x256xf32>
      tpu.vector_store %arg7[%c0_24, %c0_25], %26 {strides = array<i32>} : memref<16x256xf32, #tpu.memory_space<vmem>>, vector<16x256xf32>,
    } else {
    }
    return
  }
  func.func @transform_0(%arg0: i32) -> (i32, i32) {
    %c0_i32 = arith.constant 0 : i32
    %c0_i32_0 = arith.constant 0 : i32
    %c0_i32_1 = arith.constant 0 : i32
    return %c0_i32, %c0_i32_0 : i32, i32
  }
  func.func @transform_1(%arg0: i32) -> (i32, i32) {
    %c0_i32 = arith.constant 0 : i32
    %c0_i32_0 = arith.constant 0 : i32
    %c0_i32_1 = arith.constant 0 : i32
    return %c0_i32, %c0_i32_0 : i32, i32
  }
  func.func @transform_2(%arg0: i32) -> (i32, i32, i32) {
    %c0_i32 = arith.constant 0 : i32
    %c0_i32_0 = arith.constant 0 : i32
    %c0_i32_1 = arith.constant 0 : i32
    return %arg0, %c0_i32, %c0_i32_0 : i32, i32, i32
  }
  func.func @transform_3(%arg0: i32) -> (i32, i32, i32) {
    %c0_i32 = arith.constant 0 : i32
    %c0_i32_0 = arith.constant 0 : i32
    %c0_i32_1 = arith.constant 0 : i32
    return %arg0, %c0_i32, %c0_i32_0 : i32, i32, i32
  }
  func.func @transform_4(%arg0: i32) -> (i32, i32, i32) {
    %c0_i32 = arith.constant 0 : i32
    %c0_i32_0 = arith.constant 0 : i32
    %c0_i32_1 = arith.constant 0 : i32
    return %arg0, %c0_i32, %c0_i32_0 : i32, i32, i32
  }
  func.func @transform_5(%arg0: i32) -> (i32, i32, i32) {
    %c0_i32 = arith.constant 0 : i32
    %c0_i32_0 = arith.constant 0 : i32
    %c0_i32_1 = arith.constant 0 : i32
    return %arg0, %c0_i32, %c0_i32_0 : i32, i32, i32
  }
  func.func @transform_6(%arg0: i32) -> (i32, i32) {
    %c0_i32 = arith.constant 0 : i32
    %c0_i32_0 = arith.constant 0 : i32
    %c0_i32_1 = arith.constant 0 : i32
    return %c0_i32, %c0_i32_0 : i32, i32
  }
}

</mosaic_0001>

<bundles_post_ra>
// kernel: tpu_custom_call.1
= control target key start
LH: loop header
LB: loop body
LE: loop exit
PB: predicated region body
PF: predicated region fallthrough
CT: control target
= control target key end

     0   :  { %s2588_s0 = inlined_call_operand.hbm [shape: f32[16,16], index: 0, kind: input, shape index: {}]   ;;  %s2589_s1 = inlined_call_operand.hbm [shape: f32[16,256], index: 1, kind: input, shape index: {}]   ;;  %s2590_s2 = inlined_call_operand.hbm [shape: f32[6,256,512], index: 2, kind: input, shape index: {}]   ;;  %s2591_s3 = inlined_call_operand.hbm [shape: f32[6,1,512], index: 3, kind: input, shape index: {}]   ;;  %s2592_s4 = inlined_call_operand.hbm [shape: f32[6,512,256], index: 4, kind: input, shape index: {}]   ;;  %s2593_s5 = inlined_call_operand.hbm [shape: f32[6,1,256], index: 5, kind: input, shape index: {}]   ;;  %s2594_s6 = inlined_call_operand.hbm [shape: f32[16,256], index: 6, kind: output, shape index: {}]  }
   0x1   :  { %2608 = sst [smem:[#allocation18_spill]] %s2588_s0 }
   0x2   :  { %11 = vsyncpa [#allocation4], 0 }
   0x3   :  { %12 = vsyncpa [#allocation7], 0 }
   0x4   :  { %13 = vsyncpa [#allocation5], 0  ;;  %s1962_s21 = smov 0   ;;  %s1964_s22 = smov 0  }
   0x5   :  { %s1966_s23 = smov 0   ;;  %s1968_s24 = smov 0  }
   0x6 LB: > { %s1981_s25 = sadd.s32 4294967295, %s1909_s24   ;;  %s1984_s26 = sadd.s32 1, %s1909_s24   ;;  %s1909_s24 = sphi %s1968_s24, %s2639_s24   ;;  %s1905_s23 = sphi %s1966_s23, %s2638_s23   ;;  %s1901_s22 = sphi %s1964_s22, %s2637_s22   ;;  %s1897_s21 = sphi %s1962_s21, %s2636_s21  }
   0x7   : > { %s65_s27 = ssub.s32 %s1909_s24, %s1984_s26  ;;  %s68_s28 = sadd.s32 1, %s1905_s23 }
   0x8   : > { %p66_p0 = scmp.eq.s32.totalorder %s65_s27, 0  ;;  %p75_p1 = scmp.ne.s32.totalorder %s1905_s23, %s1901_s22 }
   0x9   : > { %p76_p2 = scmp.eq.s32.totalorder %s1909_s24, 0  ;;  %p81_p3 = scmp.ne.s32.totalorder %s1901_s22, %s1897_s21 }
   0xa   : > { %s1994_s29 = scalar_select %p66_p0, %s1905_s23, %s68_s28  }
   0xb   : > { %p1996_p4 = por %p76_p2, %p75_p1  ;;  %p2595_p5 = scmp.eq.s32.totalorder %s1981_s25, 0 }
   0xc   : > { %2609 = sst [smem:[#allocation17_spill]] %s1994_s29  ;;  %p1267_p6 = scmp.ge.s32.totalorder %s1909_s24, 1 }
   0xd   : > { %p191_p7 = scmp.lt.s32.totalorder %s1909_s24, 7  ;;  %p2005_p8 = por %p2595_p5, %p81_p3 }
   0xe   : > { %s1911_s9 = smov [#allocation3]   ;;  %p1612_p13 = scmp.lt.s32.totalorder %s1909_s24, 6 }
   0xf   : > { %s2611_s7 = scalar_select %p2005_p8, 1, 0 }
  0x10   : > { %p2010_p10 = pnand %p1267_p6, %p191_p7  ;;  %s203_s10 = sshll.u32 %s1911_s9, 4  ;;  %s204_s10 = int_to_ptr.vmem [resolvable:$true] %s203_s10 }
  0x11   : > { %s230_s12 = sand.u32 1, %s1909_s24   ;;  %s2025_s13 = sand.u32 1, %s1905_s23  }
  0x12   : > { %s2612_s8 = scalar_select %p2010_p10, 1, 0 }
  0x13   : > { %p1590_p11 = pneg %p2010_p10  ;;  %p2029_p0 = pnand %p1612_p13, %p1996_p4 }
  0x14   : > { %s2615_s0 = sld [smem:[#allocation18_spill]] }
  0x15   : > { %p2018_p12 = pnand %p1590_p11, %p2595_p5 }
  0x16   : > { %s2614_s14 = scalar_select %p2029_p0, 1, 0 }
  0x17   : > { %s2613_s11 = scalar_select %p2018_p12, 1, 0 }
  0x18   : > { %p2599_p2 = pneg %p2018_p12 }
  0x1a   : > { %s1661_s17 = scalar_lea.hbm %s2615_s0, 256 }
  0x1b   : > { %p1662_p1 = scmp.ne.s32.totalorder %s2615_s0, %s1661_s17  ;;  %p1668_p4 = scmp.lt.u32.totalorder %s1661_s17, %s2615_s0 }
  0x1d   : > { %p1664_p3 = pnand %p2599_p2, %p1662_p1 }
  0x1f   : > { %p1665_p6 = pneg %p1664_p3 }
  0x21   : > { %p1670_p7 = pnand %p1668_p4, %p1665_p6 }
  0x23   : > { %1673 = shalt.err (!%p1670_p7)
}
  0x24   : > { %s1674_s27 = scalar_lea.vmem %s204_s10, 256  ;;  %p1682_p5 = scmp.lt.s32.totalorder %s204_s10, %s204_s10 }
  0x25   : > { %p1675_p11 = scmp.ne.s32.totalorder %s204_s10, %s1674_s27  ;;  %p1683_p8 = scmp.lt.s32.totalorder %s1674_s27, %s1674_s27 }
  0x27   : > { %p1677_p13 = pnand %p1675_p11, %p2599_p2  ;;  %p1684_p10 = por %p1683_p8, %p1682_p5 }
  0x29   : > { %p1678_p9 = pneg %p1677_p13 }
  0x2b   : > { %p1685_p0 = pnand %p1684_p10, %p1678_p9 }
  0x2d   : > { %1688 = shalt.err (!%p1685_p0)
}
  0x2e   : > { %s1912_s28 = smov 128   ;;  %s1913_s30 = smov 8  }
  0x2f   : > { %1593 = dma.hbm_to_vmem [thread:$0]  (!%p2018_p12), %s2615_s0, 256, %s204_s10, [#allocation4], %s1912_s28, %s1912_s28, %s1913_s30  }
  0x30   : > { %s2602_s16 = sshll.u32 %s2025_s13, 10  ;;  %s2603_s17 = sshll.u32 %s1909_s24, 14 }
  0x31   : > { %s2062_s20 = scalar_lea.hbm %s2590_s2, %s2603_s17  ;;  %s234_s21 = scalar_lea.vmem [#allocation8], %s2602_s16 }
  0x32   : > { %s241_s27 = sshll.u32 %s234_s21, 4  ;;  %s2068_s29 = scalar_lea.sflag [#allocation4], %s230_s12  ;;  %s2066_s27 = int_to_ptr.vmem [resolvable:$true] %s241_s27 }
  0x33   : > { %s1689_s10 = scalar_lea.hbm %s2062_s20, 16384  ;;  %p2616_p8 = scmp.ne.s32.totalorder %s2614_s14, 0 }
  0x34   : > { %p1690_p5 = scmp.ne.s32.totalorder %s2062_s20, %s1689_s10  ;;  %s1694_s15 = scalar_lea.hbm %s2590_s2, 98304 }
  0x35   : > { %p2074_p9 = pneg %p2616_p8  ;;  %p1695_p1 = scmp.lt.u32.totalorder %s2062_s20, %s2590_s2 }
  0x36   : > { %p1696_p3 = scmp.lt.u32.totalorder %s1694_s15, %s1689_s10  ;;  %p1698_p4 = scmp.lt.u32.totalorder %s1689_s10, %s2062_s20 }
  0x37   : > { %s2617_s28 = scalar_select %p2074_p9, 1, 0 }
  0x38   : > { %p1692_p10 = pnand %p2074_p9, %p1690_p5  ;;  %p1697_p6 = por %p1696_p3, %p1695_p1 }
  0x3a   : > { %p1693_p0 = pneg %p1692_p10  ;;  %p1699_p7 = por %p1698_p4, %p1697_p6 }
  0x3c   : > { %p1700_p11 = pnand %p1699_p7, %p1693_p0 }
  0x3e   : > { %1703 = shalt.err (!%p1700_p11)
}
  0x3f   : > { %s1704_s12 = scalar_lea.vmem %s2066_s27, 16384  ;;  %s1914_s21 = smov [#allocation8]  }
  0x40   : > { %p1705_p13 = scmp.ne.s32.totalorder %s2066_s27, %s1704_s12  ;;  %s1709_s30 = sshll.u32 %s1914_s21, 4  ;;  %s1710_s30 = int_to_ptr.vmem [resolvable:$false] %s1709_s30 }
  0x41   : > { %s1711_s9 = scalar_lea.vmem %s1710_s30, 32768  ;;  %p1712_p2 = scmp.lt.s32.totalorder %s2066_s27, %s1710_s30 }
  0x42   : > { %p1707_p5 = pnand %p1705_p13, %p2074_p9  ;;  %p1713_p12 = scmp.lt.s32.totalorder %s1711_s9, %s1704_s12 }
  0x44   : > { %p1708_p10 = pneg %p1707_p5  ;;  %p1714_p1 = por %p1713_p12, %p1712_p2 }
  0x46   : > { %p1715_p3 = pnand %p1714_p1, %p1708_p10 }
  0x48   : > { %1718 = shalt.err (!%p1715_p3)
}
  0x49   : > { %s1915_s10 = smov 512   ;;  %s1916_s15 = smov 32  }
  0x4a   : > { %1600 = dma.hbm_to_vmem [thread:$0]  (!%p2616_p8), %s2062_s20, 16384, %s2066_s27, %s2068_s29, %s1915_s10, %s1915_s10, %s1916_s15  }
  0x4b   : > { %s1274_s18 = sshll.u32 %s2025_s13, 2  ;;  %s1299_s19 = sshll.u32 %s1909_s24, 6 }
  0x4c   : > { %s2103_s12 = scalar_lea.hbm %s2591_s3, %s1299_s19  ;;  %s255_s30 = scalar_lea.vmem [#allocation9], %s1274_s18 }
  0x4d   : > { %s263_s9 = sshll.u32 %s255_s30, 4  ;;  %s1719_s17 = scalar_lea.hbm %s2103_s12, 64  ;;  %s264_s9 = int_to_ptr.vmem [resolvable:$true] %s263_s9 }
  0x4e   : > { %p1720_p12 = scmp.ne.s32.totalorder %s2103_s12, %s1719_s17  ;;  %s1724_s10 = scalar_lea.hbm %s2591_s3, 384 }
  0x4f   : > { %p1725_p6 = scmp.lt.u32.totalorder %s2103_s12, %s2591_s3  ;;  %p1726_p4 = scmp.lt.u32.totalorder %s1724_s10, %s1719_s17 }
  0x50   : > { %p1722_p2 = pnand %p1720_p12, %p2074_p9  ;;  %p1728_p11 = scmp.lt.u32.totalorder %s1719_s17, %s2103_s12 }
  0x51   : > { %p1727_p7 = por %p1726_p4, %p1725_p6 }
  0x52   : > { %p1723_p0 = pneg %p1722_p2 }
  0x53   : > { %p1729_p13 = por %p1728_p11, %p1727_p7 }
  0x55   : > { %p1730_p5 = pnand %p1729_p13, %p1723_p0 }
  0x57   : > { %1733 = shalt.err (!%p1730_p5)
}
  0x58   : > { %s1734_s18 = scalar_lea.vmem %s264_s9, 64  ;;  %s1917_s19 = smov [#allocation9]  }
  0x59   : > { %p1735_p10 = scmp.ne.s32.totalorder %s264_s9, %s1734_s18  ;;  %s1739_s21 = sshll.u32 %s1917_s19, 4  ;;  %s1740_s21 = int_to_ptr.vmem [resolvable:$false] %s1739_s21 }
  0x5a   : > { %s1741_s30 = scalar_lea.vmem %s1740_s21, 128  ;;  %p1742_p12 = scmp.lt.s32.totalorder %s264_s9, %s1740_s21 }
  0x5b   : > { %p1737_p1 = pnand %p1735_p10, %p2074_p9  ;;  %p1743_p2 = scmp.lt.s32.totalorder %s1741_s30, %s1734_s18 }
  0x5d   : > { %p1738_p3 = pneg %p1737_p1  ;;  %p1744_p8 = por %p1743_p2, %p1742_p12 }
  0x5f   : > { %p1745_p4 = pnand %p1744_p8, %p1738_p3 }
  0x61   : > { %1748 = shalt.err (!%p1745_p4)
}
  0x62   : > { %p2618_p6 = scmp.ne.s32.totalorder %s2614_s14, 0  ;;  %s2619_s17 = sshll.u32 %s1909_s24, 14 }
  0x63   : > { %s2128_s10 = scalar_lea.hbm %s2592_s4, %s2619_s17  ;;  %s2620_s15 = sshll.u32 %s2025_s13, 10 }
  0x64   : > { %1603 = dma.hbm_to_vmem [thread:$0]  (!%p2618_p6), %s2103_s12, 64, %s264_s9, %s2068_s29  }
  0x65   : > { %s274_s16 = scalar_lea.vmem [#allocation10], %s2620_s15  ;;  %s1918_s19 = smov [#allocation6]  }
  0x66   : > { %s281_s18 = sshll.u32 %s274_s16, 4  ;;  %s2134_s21 = sshll.u32 %s1918_s19, 4  ;;  %s2132_s18 = int_to_ptr.vmem [resolvable:$true] %s281_s18  ;;  %s217_s21 = int_to_ptr.vmem [resolvable:$true] %s2134_s21 }
  0x67   : > { %s1749_s30 = scalar_lea.hbm %s2128_s10, 16384  ;;  %s1754_s17 = scalar_lea.hbm %s2592_s4, 98304 }
  0x68   : > { %p1750_p8 = scmp.ne.s32.totalorder %s2128_s10, %s1749_s30  ;;  %p1755_p11 = scmp.lt.u32.totalorder %s2128_s10, %s2592_s4 }
  0x69   : > { %p1756_p13 = scmp.lt.u32.totalorder %s1754_s17, %s1749_s30  ;;  %p1758_p10 = scmp.lt.u32.totalorder %s1749_s30, %s2128_s10 }
  0x6a   : > { %p1752_p0 = pnand %p1750_p8, %p2074_p9 }
  0x6b   : > { %p1757_p5 = por %p1756_p13, %p1755_p11 }
  0x6c   : > { %p1753_p7 = pneg %p1752_p0 }
  0x6d   : > { %p1759_p1 = por %p1758_p10, %p1757_p5 }
  0x6f   : > { %p1760_p3 = pnand %p1759_p1, %p1753_p7 }
  0x71   : > { %1763 = shalt.err (!%p1760_p3)
}
  0x72   : > { %s1764_s15 = scalar_lea.vmem %s2132_s18, 16384  ;;  %s1919_s16 = smov [#allocation10]  }
  0x73   : > { %p1765_p12 = scmp.ne.s32.totalorder %s2132_s18, %s1764_s15  ;;  %s1769_s19 = sshll.u32 %s1919_s16, 4  ;;  %s1770_s19 = int_to_ptr.vmem [resolvable:$false] %s1769_s19 }
  0x74   : > { %s1771_s12 = scalar_lea.vmem %s1770_s19, 32768  ;;  %p1772_p8 = scmp.lt.s32.totalorder %s2132_s18, %s1770_s19 }
  0x75   : > { %p1767_p2 = pnand %p1765_p12, %p2074_p9  ;;  %p1773_p0 = scmp.lt.s32.totalorder %s1771_s12, %s1764_s15 }
  0x77   : > { %p1768_p4 = pneg %p1767_p2  ;;  %p1774_p11 = por %p1773_p0, %p1772_p8 }
  0x79   : > { %p1775_p13 = pnand %p1774_p11, %p1768_p4 }
  0x7b   : > { %1778 = shalt.err (!%p1775_p13)
}
  0x7c   : > { %s1920_s30 = smov 256   ;;  %s1921_s9 = smov 16  }
  0x7d   : > { %1606 = dma.hbm_to_vmem [thread:$0]  (!%p2618_p6), %s2128_s10, 16384, %s2132_s18, %s2068_s29, %s1920_s30, %s1920_s30, %s1921_s9  }
  0x7e   : > { %s1280_s17 = sshll.u32 %s2025_s13, 1  ;;  %s1779_s15 = scalar_lea.hbm %s2589_s1, 512 }
  0x7f   : > { %p1780_p7 = scmp.ne.s32.totalorder %s2589_s1, %s1779_s15  ;;  %p2621_p5 = scmp.ne.s32.totalorder %s2613_s11, 0 }
  0x80   : > { %p1786_p12 = scmp.lt.u32.totalorder %s1779_s15, %s2589_s1 }
  0x81   : > { %p2622_p10 = pneg %p2621_p5 }
  0x83   : > { %p1782_p1 = pnand %p1780_p7, %p2622_p10 }
  0x85   : > { %p1783_p3 = pneg %p1782_p1 }
  0x87   : > { %p1788_p2 = pnand %p1786_p12, %p1783_p3 }
  0x89   : > { %1791 = shalt.err (!%p1788_p2)
}
  0x8a   : > { %s1792_s10 = scalar_lea.vmem %s217_s21, 512  ;;  %p2623_p8 = pmov %p2622_p10 }
  0x8b   : > { %p1793_p4 = scmp.ne.s32.totalorder %s217_s21, %s1792_s10  ;;  %p1800_p13 = scmp.lt.s32.totalorder %s217_s21, %s217_s21 }
  0x8c   : > { %p1801_p6 = scmp.lt.s32.totalorder %s1792_s10, %s1792_s10 }
  0x8d   : > { %p1795_p0 = pnand %p1793_p4, %p2623_p8 }
  0x8e   : > { %p1802_p9 = por %p1801_p6, %p1800_p13 }
  0x8f   : > { %p1796_p11 = pneg %p1795_p0 }
  0x91   : > { %p1803_p7 = pnand %p1802_p9, %p1796_p11 }
  0x93   : > { %1806 = shalt.err (!%p1803_p7)
}
  0x94   : > { %1596 = dma.hbm_to_vmem [thread:$0]  (!%p2621_p5), %s2589_s1, 512, %s217_s21, [#allocation7], %s1920_s30, %s1920_s30, %s1921_s9  }
  0x95   : > { %s1301_s0 = sshll.u32 %s1909_s24, 5  ;;  %s295_s16 = scalar_lea.vmem [#allocation11], %s1280_s17 }
  0x96   : > { %s2184_s15 = scalar_lea.hbm %s2593_s5, %s1301_s0  ;;  %s303_s19 = sshll.u32 %s295_s16, 4  ;;  %s304_s19 = int_to_ptr.vmem [resolvable:$true] %s303_s19 }
  0x97   : > { %s1807_s11 = scalar_lea.hbm %s2184_s15, 32  ;;  %p2624_p6 = scmp.ne.s32.totalorder %s2617_s28, 0 }
  0x98   : > { %p1808_p9 = scmp.ne.s32.totalorder %s2184_s15, %s1807_s11  ;;  %s1812_s24 = scalar_lea.hbm %s2593_s5, 192 }
  0x99   : > { %p1813_p5 = scmp.lt.u32.totalorder %s2184_s15, %s2593_s5  ;;  %p1814_p3 = scmp.lt.u32.totalorder %s1812_s24, %s1807_s11 }
  0x9a   : > { %p1810_p10 = pnand %p1808_p9, %p2624_p6  ;;  %p1816_p2 = scmp.lt.u32.totalorder %s1807_s11, %s2184_s15 }
  0x9b   : > { %p1815_p12 = por %p1814_p3, %p1813_p5 }
  0x9c   : > { %p1811_p1 = pneg %p1810_p10 }
  0x9d   : > { %p1817_p4 = por %p1816_p2, %p1815_p12 }
  0x9f   : > { %p1818_p8 = pnand %p1817_p4, %p1811_p1 }
  0xa1   : > { %1821 = shalt.err (!%p1818_p8)
}
  0xa2   : > { %s1822_s17 = scalar_lea.vmem %s304_s19, 32  ;;  %s1922_s10 = smov [#allocation11]  }
  0xa3   : > { %p1823_p0 = scmp.ne.s32.totalorder %s304_s19, %s1822_s17  ;;  %s1827_s13 = sshll.u32 %s1922_s10, 4  ;;  %s1828_s13 = int_to_ptr.vmem [resolvable:$false] %s1827_s13 }
  0xa4   : > { %s1829_s18 = scalar_lea.vmem %s1828_s13, 64  ;;  %p1830_p7 = scmp.lt.s32.totalorder %s304_s19, %s1828_s13 }
  0xa5   : > { %p1825_p11 = pnand %p1823_p0, %p2624_p6  ;;  %p1831_p9 = scmp.lt.s32.totalorder %s1829_s18, %s1822_s17 }
  0xa7   : > { %p1826_p13 = pneg %p1825_p11  ;;  %p1832_p10 = por %p1831_p9, %p1830_p7 }
  0xa9   : > { %p1833_p3 = pnand %p1832_p10, %p1826_p13 }
  0xab   : > { %1836 = shalt.err (!%p1833_p3)
}
  0xac   : > { %p2625_p5 = scmp.ne.s32.totalorder %s2614_s14, 0  ;;  %p2626_p1 = scmp.ne.s32.totalorder %s2612_s8, 0 }
  0xad   : > { %p2627_p6 = scmp.eq.s32.totalorder (!%p2626_p1), %s1981_s25, 0 }
  0xae   : > { %1609 = dma.hbm_to_vmem [thread:$0]  (!%p2625_p5), %s2184_s15, 32, %s304_s19, %s2068_s29  }
  0xaf   : > { %312 = sbr.rel (%p2626_p1) target bundleno = 957 (0x3bd), region = 44 }
  0xb6   : > { %1880 = dma.done.wait (%p2627_p6), [#allocation4], 256   ;;  %p2628_p12 = pmov %p2627_p6 }
  0xb7   : > { %p2629_p2 = pmov %p2627_p6 }
  0xb8   : > { %1882 = vsyncadd (%p2628_p12), [#allocation4], 4294967040 }
  0xb9   : > { %1884 = dma.done.wait (%p2629_p2), [#allocation7], 512   ;;  %p2630_p4 = pmov %p2629_p2 }
  0xba   : > { %s322_s14 = sand.u32 1, %s1981_s25   ;;  %s324_s29 = sand.u32 1, %s1901_s22  }
  0xbb   : > { %1886 = vsyncadd (%p2630_p4), [#allocation7], 4294966784  ;;  %s1286_s28 = sshll.u32 %s324_s29, 10  ;;  %s323_s8 = scalar_lea.sflag [#allocation4], %s322_s14 }
  0xbc   : > { %s2216_s0 = scalar_lea.vmem [#allocation8], %s1286_s28  ;;  %p2631_p8 = scmp.ne.s32.totalorder %s2611_s7, 0 }
  0xbe   : > { %1888 = dma.done.wait (%p2631_p8), %s323_s8, 32864  }
  0xbf   : > { %1890 = vsyncadd (%p2631_p8), %s323_s8, 4294934432  ;;  %s1287_s20 = sshll.u32 %s324_s29, 2  ;;  %s1289_s27 = sshll.u32 %s324_s29, 1 }
  0xc0   : > { %s2222_s15 = scalar_lea.vmem [#allocation9], %s1287_s20  ;;  %s2224_s16 = scalar_lea.vmem [#allocation10], %s1286_s28 }
  0xc1   : > { %s2226_s19 = scalar_lea.vmem [#allocation11], %s1289_s27  ;;  %p2632_p0 = scmp.ne.s32.totalorder %s1981_s25, 0 }
  0xc2   : > { %v396_v0 = vld [vmem:[#allocation6] sm:$0xff] (!%p2632_p0)  ;;  %v397_v1 = vld [vmem:[#allocation6 + $0x8] sm:$0xff] (!%p2632_p0)  ;;  %v398_v2 = vld [vmem:[#allocation6 + $0x10] sm:$0xff] (!%p2632_p0) }
  0xc3   : > { %395 = sbr.rel (%p2632_p0) target bundleno = 202 (0xca), region = 72  ;;  %400 = vst [vmem:[#allocation2] sm:$0xff] (!%p2632_p0), %v396_v0  ;;  %401 = vst [vmem:[#allocation2 + $0x8] sm:$0xff] (!%p2632_p0), %v397_v1  ;;  %v399_v3 = vld [vmem:[#allocation6 + $0x18] sm:$0xff] (!%p2632_p0) }
  0xc4   : > { %402 = vst [vmem:[#allocation2 + $0x10] sm:$0xff] (!%p2632_p0), %v398_v2  ;;  %403 = vst [vmem:[#allocation2 + $0x18] sm:$0xff] (!%p2632_p0), %v399_v3 }
  0xca PF: > { %v2230_v4 = vld [vmem:[#allocation2 + $0x8] sm:$0xff]  ;;  %v2234_v6 = vld [vmem:[#allocation2] sm:$0xff]  ;;  %v1923_v9 = vmov 0.0   ;;  %v499_v11 = vld [vmem:[%s2216_s0 + $0x8] sm:$0xff]  ;;  %vm410_vm0 = vcmask 130048   ;;  %p1104_p11 = scmp.lt.s32.totalorder %s1981_s25, 5 }
  0xcb   : > { %v2232_v5 = vld [vmem:[#allocation2 + $0x18] sm:$0xff]  ;;  %v2238_v8 = vld [vmem:[#allocation2 + $0x10] sm:$0xff]  ;;  %481 = vmatprep.mubr.f32.mxu0 %v1923_v9  ;;  %v408_v18 = vld [vmem:[#allocation3] sm:$0xff]  ;;  %p1293_p13 = scmp.ne.s32.totalorder %s1981_s25, 5 }
  0xcc   : > { %v1302_v7 = vpack.c.bf16 %v2232_v5, %v2230_v4  ;;  %v1304_v10 = vpack.c.bf16 %v2238_v8, %v2234_v6  ;;  %v503_v12 = vld [vmem:[%s2216_s0 + $0x28] sm:$0xff]  ;;  %v498_v13 = vld [vmem:[%s2216_s0] sm:$0xff]  ;;  %v409_v25 = vld [vmem:[#allocation3 + $0x8] sm:$0xff]  ;;  %s1109_s7 = scalar_select %p1104_p11, 1, 0 }
  0xcd   : > { %v1306_v14 = vpack.c.bf16 %v503_v12, %v499_v11  ;;  %v502_v15 = vld [vmem:[%s2216_s0 + $0x20] sm:$0xff]  ;;  %v507_v16 = vld [vmem:[%s2216_s0 + $0x48] sm:$0xff] }
  0xce   : > { %1303 = vmatprep.subr.bf16.mxu0 %v1302_v7  ;;  %v511_v17 = vld [vmem:[%s2216_s0 + $0x68] sm:$0xff]  ;;  %v1308_v19 = vpack.c.bf16 %v502_v15, %v498_v13  ;;  %v506_v21 = vld [vmem:[%s2216_s0 + $0x40] sm:$0xff] }
  0xcf   : > { %1305 = vmatpush1.bf16.msra.mxu0 %v1304_v10  ;;  %v1310_v20 = vpack.c.bf16 %v511_v17, %v507_v16  ;;  %v510_v22 = vld [vmem:[%s2216_s0 + $0x60] sm:$0xff]  ;;  %v515_v23 = vld [vmem:[%s2216_s0 + $0x88] sm:$0xff] }
  0xd0   : > { %1307 = vmatprep.subr.bf16.mxu0 %v1306_v14  ;;  %v519_v24 = vld [vmem:[%s2216_s0 + $0xa8] sm:$0xff]  ;;  %v1312_v26 = vpack.c.bf16 %v510_v22, %v506_v21  ;;  %v514_v28 = vld [vmem:[%s2216_s0 + $0x80] sm:$0xff] }
  0xd1   : > { %v1314_v27 = vpack.c.bf16 %v519_v24, %v515_v23  ;;  %v518_v29 = vld [vmem:[%s2216_s0 + $0xa0] sm:$0xff]  ;;  %v523_v30 = vld [vmem:[%s2216_s0 + $0xc8] sm:$0xff] }
  0xd2   : > { %1291 = vmatmul.mubr.msk.f32.vlgmr.msra.gmra.mrb[0].mxu0 %vm410_vm0, %v408_v18  ;;  %v527_v31 = vld [vmem:[%s2216_s0 + $0xe8] sm:$0xff]  ;;  %v1316_v32 = vpack.c.bf16 %v518_v29, %v514_v28  ;;  %v522_v34 = vld [vmem:[%s2216_s0 + $0xc0] sm:$0xff] }
  0xd3   : > { %487 = vmatprep.mubr.f32.mxu0 %v1923_v9  ;;  %1309 = vmatpush1.bf16.msra.mxu0 %v1308_v19  ;;  %v1318_v33 = vpack.c.bf16 %v527_v31, %v523_v30  ;;  %v526_v35 = vld [vmem:[%s2216_s0 + $0xe0] sm:$0xff]  ;;  %v531_v36 = vld [vmem:[%s2216_s0 + $0x108] sm:$0xff] }
  0xd4   : > { %1311 = vmatprep.subr.bf16.mxu0 %v1310_v20  ;;  %v535_v37 = vld [vmem:[%s2216_s0 + $0x128] sm:$0xff]  ;;  %v1320_v38 = vpack.c.bf16 %v526_v35, %v522_v34  ;;  %v530_v40 = vld [vmem:[%s2216_s0 + $0x100] sm:$0xff] }
  0xd5   : > { %v1322_v39 = vpack.c.bf16 %v535_v37, %v531_v36  ;;  %v534_v41 = vld [vmem:[%s2216_s0 + $0x120] sm:$0xff]  ;;  %v539_v42 = vld [vmem:[%s2216_s0 + $0x148] sm:$0xff] }
  0xd6   : > { %1292 = vmatmul.mubr.msk.f32.gmra.mrb[2].mxu0 %vm410_vm0, %v409_v25  ;;  %v543_v43 = vld [vmem:[%s2216_s0 + $0x168] sm:$0xff]  ;;  %v1324_v44 = vpack.c.bf16 %v534_v41, %v530_v40  ;;  %v538_v46 = vld [vmem:[%s2216_s0 + $0x140] sm:$0xff] }
  0xd7   : > { %1313 = vmatpush1.bf16.msra.mxu0 %v1312_v26  ;;  %v1326_v45 = vpack.c.bf16 %v543_v43, %v539_v42  ;;  %v542_v47 = vld [vmem:[%s2216_s0 + $0x160] sm:$0xff]  ;;  %v547_v48 = vld [vmem:[%s2216_s0 + $0x188] sm:$0xff] }
  0xd8   : > { %1315 = vmatprep.subr.bf16.mxu0 %v1314_v27  ;;  %v551_v49 = vld [vmem:[%s2216_s0 + $0x1a8] sm:$0xff]  ;;  %v1328_v50 = vpack.c.bf16 %v542_v47, %v538_v46  ;;  %v546_v52 = vld [vmem:[%s2216_s0 + $0x180] sm:$0xff] }
  0xd9   : > { %v1330_v51 = vpack.c.bf16 %v551_v49, %v547_v48  ;;  %v550_v53 = vld [vmem:[%s2216_s0 + $0x1a0] sm:$0xff]  ;;  %v555_v54 = vld [vmem:[%s2216_s0 + $0x1c8] sm:$0xff]  ;;  %v501_v49 = vld [vmem:[%s2216_s0 + $0x18] sm:$0xff] }
  0xda   : > { %v559_v55 = vld [vmem:[%s2216_s0 + $0x1e8] sm:$0xff]  ;;  %v1332_v56 = vpack.c.bf16 %v550_v53, %v546_v52  ;;  %v554_v58 = vld [vmem:[%s2216_s0 + $0x1c0] sm:$0xff]  ;;  %v811_v52 = vld [vmem:[%s2224_s16 + $0x8] sm:$0xff] }
  0xdb   : > { %1317 = vmatpush1.bf16.msra.mxu0 %v1316_v32  ;;  %v1334_v57 = vpack.c.bf16 %v559_v55, %v555_v54  ;;  %v558_v59 = vld [vmem:[%s2216_s0 + $0x1e0] sm:$0xff]  ;;  %v563_v60 = vld [vmem:[%s2216_s0 + $0x208] sm:$0xff] }
  0xdc   : > { %1319 = vmatprep.subr.bf16.mxu0 %v1318_v33  ;;  %v567_v61 = vld [vmem:[%s2216_s0 + $0x228] sm:$0xff]  ;;  %v1336_v62 = vpack.c.bf16 %v558_v59, %v554_v58  ;;  %v562_v0 = vld [vmem:[%s2216_s0 + $0x200] sm:$0xff] }
  0xdd   : > { %v1338_v63 = vpack.c.bf16 %v567_v61, %v563_v60  ;;  %v566_v1 = vld [vmem:[%s2216_s0 + $0x220] sm:$0xff]  ;;  %v571_v2 = vld [vmem:[%s2216_s0 + $0x248] sm:$0xff] }
  0xde   : > { %v575_v3 = vld [vmem:[%s2216_s0 + $0x268] sm:$0xff]  ;;  %v1340_v7 = vpack.c.bf16 %v566_v1, %v562_v0  ;;  %v570_v10 = vld [vmem:[%s2216_s0 + $0x240] sm:$0xff] }
  0xdf   : > { %1321 = vmatpush1.bf16.msra.mxu0 %v1320_v38  ;;  %v1342_v9 = vpack.c.bf16 %v575_v3, %v571_v2  ;;  %v574_v11 = vld [vmem:[%s2216_s0 + $0x260] sm:$0xff]  ;;  %v579_v12 = vld [vmem:[%s2216_s0 + $0x288] sm:$0xff] }
  0xe0   : > { %1323 = vmatprep.subr.bf16.mxu0 %v1322_v39  ;;  %v583_v13 = vld [vmem:[%s2216_s0 + $0x2a8] sm:$0xff]  ;;  %v1344_v14 = vpack.c.bf16 %v574_v11, %v570_v10  ;;  %v578_v16 = vld [vmem:[%s2216_s0 + $0x280] sm:$0xff] }
  0xe1   : > { %v1346_v15 = vpack.c.bf16 %v583_v13, %v579_v12  ;;  %v582_v17 = vld [vmem:[%s2216_s0 + $0x2a0] sm:$0xff]  ;;  %v587_v18 = vld [vmem:[%s2216_s0 + $0x2c8] sm:$0xff] }
  0xe2   : > { %v591_v19 = vld [vmem:[%s2216_s0 + $0x2e8] sm:$0xff]  ;;  %v1348_v20 = vpack.c.bf16 %v582_v17, %v578_v16  ;;  %v586_v22 = vld [vmem:[%s2216_s0 + $0x2c0] sm:$0xff] }
  0xe3   : > { %1325 = vmatpush1.bf16.msra.mxu0 %v1324_v44  ;;  %v1350_v21 = vpack.c.bf16 %v591_v19, %v587_v18  ;;  %v590_v23 = vld [vmem:[%s2216_s0 + $0x2e0] sm:$0xff]  ;;  %v595_v24 = vld [vmem:[%s2216_s0 + $0x308] sm:$0xff] }
  0xe4   : > { %1327 = vmatprep.subr.bf16.mxu0 %v1326_v45  ;;  %v599_v25 = vld [vmem:[%s2216_s0 + $0x328] sm:$0xff]  ;;  %v1352_v26 = vpack.c.bf16 %v590_v23, %v586_v22  ;;  %v594_v28 = vld [vmem:[%s2216_s0 + $0x300] sm:$0xff] }
  0xe5   : > { %v1354_v27 = vpack.c.bf16 %v599_v25, %v595_v24  ;;  %v598_v29 = vld [vmem:[%s2216_s0 + $0x320] sm:$0xff]  ;;  %v603_v30 = vld [vmem:[%s2216_s0 + $0x348] sm:$0xff] }
  0xe6   : > { %v607_v31 = vld [vmem:[%s2216_s0 + $0x368] sm:$0xff]  ;;  %v1356_v32 = vpack.c.bf16 %v598_v29, %v594_v28  ;;  %v602_v34 = vld [vmem:[%s2216_s0 + $0x340] sm:$0xff] }
  0xe7   : > { %1329 = vmatpush1.bf16.msra.mxu0 %v1328_v50  ;;  %v1358_v33 = vpack.c.bf16 %v607_v31, %v603_v30  ;;  %v606_v35 = vld [vmem:[%s2216_s0 + $0x360] sm:$0xff]  ;;  %v611_v36 = vld [vmem:[%s2216_s0 + $0x388] sm:$0xff]  ;;  %v505_v50 = vld [vmem:[%s2216_s0 + $0x38] sm:$0xff] }
  0xe8   : > { %1331 = vmatprep.subr.bf16.mxu0 %v1330_v51  ;;  %v615_v37 = vld [vmem:[%s2216_s0 + $0x3a8] sm:$0xff]  ;;  %v1360_v38 = vpack.c.bf16 %v606_v35, %v602_v34  ;;  %v610_v40 = vld [vmem:[%s2216_s0 + $0x380] sm:$0xff]  ;;  %v1370_v51 = vpack.c.bf16 %v505_v50, %v501_v49  ;;  %v848_v50 = vld [vmem:[%s2224_s16 + $0x130] sm:$0xff] }
  0xe9   : > { %v1362_v39 = vpack.c.bf16 %v615_v37, %v611_v36  ;;  %v614_v41 = vld [vmem:[%s2216_s0 + $0x3a0] sm:$0xff]  ;;  %v619_v43 = vld [vmem:[%s2216_s0 + $0x3c8] sm:$0xff] }
  0xea   : > { %v1364_v42 = vpack.c.bf16 %v614_v41, %v610_v40  ;;  %v623_v44 = vld [vmem:[%s2216_s0 + $0x3e8] sm:$0xff]  ;;  %v618_v46 = vld [vmem:[%s2216_s0 + $0x3c0] sm:$0xff] }
  0xeb   : > { %1333 = vmatpush1.bf16.msra.mxu0 %v1332_v56  ;;  %v1366_v45 = vpack.c.bf16 %v623_v44, %v619_v43  ;;  %v622_v47 = vld [vmem:[%s2216_s0 + $0x3e0] sm:$0xff]  ;;  %v810_v54 = vld [vmem:[%s2224_s16] sm:$0xff]  ;;  %v812_v56 = vld [vmem:[%s2224_s16 + $0x10] sm:$0xff] }
  0xec   : > { %1335 = vmatprep.subr.bf16.mxu0 %v1334_v57  ;;  %v1368_v48 = vpack.c.bf16 %v622_v47, %v618_v46  ;;  %v813_v53 = vld [vmem:[%s2224_s16 + $0x18] sm:$0xff]  ;;  %v815_v57 = vld [vmem:[%s2224_s16 + $0x28] sm:$0xff]  ;;  %v1436_v59 = vpack.c.bf16 %v812_v56, %v810_v54  ;;  %v814_v61 = vld [vmem:[%s2224_s16 + $0x20] sm:$0xff] }
  0xed   : > { %v1434_v55 = vpack.c.bf16 %v813_v53, %v811_v52  ;;  %v817_v58 = vld [vmem:[%s2224_s16 + $0x38] sm:$0xff]  ;;  %v818_v3 = vld [vmem:[%s2224_s16 + $0x40] sm:$0xff]  ;;  %v844_v44 = vld [vmem:[%s2224_s16 + $0x110] sm:$0xff] }
  0xee   : > { %v1438_v60 = vpack.c.bf16 %v817_v58, %v815_v57  ;;  %v821_v0 = vld [vmem:[%s2224_s16 + $0x58] sm:$0xff]  ;;  %v822_v13 = vld [vmem:[%s2224_s16 + $0x60] sm:$0xff]  ;;  %v852_v56 = vld [vmem:[%s2224_s16 + $0x150] sm:$0xff] }
  0xef   : > { %1337 = vmatpush1.bf16.msra.mxu0 %v1336_v62  ;;  %v816_v62 = vld [vmem:[%s2224_s16 + $0x30] sm:$0xff]  ;;  %1435 = vmatprep.subr.bf16.mxu1 %v1434_v55  ;;  %v825_v10 = vld [vmem:[%s2224_s16 + $0x78] sm:$0xff]  ;;  %v826_v19 = vld [vmem:[%s2224_s16 + $0x80] sm:$0xff] }
  0xf0   : > { %1339 = vmatprep.subr.bf16.mxu0 %v1338_v63  ;;  %v819_v63 = vld [vmem:[%s2224_s16 + $0x48] sm:$0xff]  ;;  %1437 = vmatpush1.bf16.msra.mxu1 %v1436_v59  ;;  %v1440_v1 = vpack.c.bf16 %v816_v62, %v814_v61  ;;  %v829_v16 = vld [vmem:[%s2224_s16 + $0x98] sm:$0xff]  ;;  %v830_v25 = vld [vmem:[%s2224_s16 + $0xa0] sm:$0xff] }
  0xf1   : > { %1439 = vmatprep.subr.bf16.mxu1 %v1438_v60  ;;  %v1442_v2 = vpack.c.bf16 %v821_v0, %v819_v63  ;;  %v833_v22 = vld [vmem:[%s2224_s16 + $0xb8] sm:$0xff]  ;;  %v834_v31 = vld [vmem:[%s2224_s16 + $0xc0] sm:$0xff]  ;;  %v855_v57 = vld [vmem:[%s2224_s16 + $0x168] sm:$0xff] }
  0xf2   : > { %v837_v28 = vld [vmem:[%s2224_s16 + $0xd8] sm:$0xff]  ;;  %v838_v37 = vld [vmem:[%s2224_s16 + $0xe0] sm:$0xff]  ;;  %v856_v62 = vld [vmem:[%s2224_s16 + $0x170] sm:$0xff] }
  0xf3   : > { %1341 = vmatpush1.bf16.msra.mxu0 %v1340_v7  ;;  %v820_v7 = vld [vmem:[%s2224_s16 + $0x50] sm:$0xff]  ;;  %v841_v34 = vld [vmem:[%s2224_s16 + $0xf8] sm:$0xff]  ;;  %v842_v43 = vld [vmem:[%s2224_s16 + $0x100] sm:$0xff] }
  0xf4   : > { %1343 = vmatprep.subr.bf16.mxu0 %v1342_v9  ;;  %v823_v9 = vld [vmem:[%s2224_s16 + $0x68] sm:$0xff]  ;;  %1441 = vmatpush1.bf16.msra.mxu1 %v1440_v1  ;;  %v1444_v11 = vpack.c.bf16 %v820_v7, %v818_v3  ;;  %v845_v40 = vld [vmem:[%s2224_s16 + $0x118] sm:$0xff]  ;;  %v1468_v47 = vpack.c.bf16 %v844_v44, %v842_v43  ;;  %v846_v49 = vld [vmem:[%s2224_s16 + $0x120] sm:$0xff] }
  0xf5   : > { %1443 = vmatprep.subr.bf16.mxu1 %v1442_v2  ;;  %v1446_v12 = vpack.c.bf16 %v825_v10, %v823_v9  ;;  %v849_v46 = vld [vmem:[%s2224_s16 + $0x138] sm:$0xff]  ;;  %v1472_v53 = vpack.c.bf16 %v848_v50, %v846_v49  ;;  %v850_v55 = vld [vmem:[%s2224_s16 + $0x140] sm:$0xff]  ;;  %v859_v63 = vld [vmem:[%s2224_s16 + $0x188] sm:$0xff] }
  0xf6   : > { %v853_v52 = vld [vmem:[%s2224_s16 + $0x158] sm:$0xff]  ;;  %v1476_v59 = vpack.c.bf16 %v852_v56, %v850_v55  ;;  %v854_v61 = vld [vmem:[%s2224_s16 + $0x160] sm:$0xff]  ;;  %v860_v7 = vld [vmem:[%s2224_s16 + $0x190] sm:$0xff] }
  0xf7   : > { %1345 = vmatpush1.bf16.msra.mxu0 %v1344_v14  ;;  %v824_v14 = vld [vmem:[%s2224_s16 + $0x70] sm:$0xff]  ;;  %v857_v58 = vld [vmem:[%s2224_s16 + $0x178] sm:$0xff]  ;;  %v1480_v1 = vpack.c.bf16 %v856_v62, %v854_v61  ;;  %v858_v3 = vld [vmem:[%s2224_s16 + $0x180] sm:$0xff] }
  0xf8   : > { %1347 = vmatprep.subr.bf16.mxu0 %v1346_v15  ;;  %v827_v15 = vld [vmem:[%s2224_s16 + $0x88] sm:$0xff]  ;;  %1445 = vmatpush1.bf16.msra.mxu1 %v1444_v11  ;;  %v1448_v17 = vpack.c.bf16 %v824_v14, %v822_v13  ;;  %v1478_v60 = vpack.c.bf16 %v857_v58, %v855_v57  ;;  %v861_v0 = vld [vmem:[%s2224_s16 + $0x198] sm:$0xff]  ;;  %v1484_v11 = vpack.c.bf16 %v860_v7, %v858_v3  ;;  %v862_v13 = vld [vmem:[%s2224_s16 + $0x1a0] sm:$0xff] }
  0xf9   : > { %1447 = vmatprep.subr.bf16.mxu1 %v1446_v12  ;;  %v1450_v18 = vpack.c.bf16 %v829_v16, %v827_v15  ;;  %v1482_v2 = vpack.c.bf16 %v861_v0, %v859_v63  ;;  %v863_v9 = vld [vmem:[%s2224_s16 + $0x1a8] sm:$0xff]  ;;  %v865_v10 = vld [vmem:[%s2224_s16 + $0x1b8] sm:$0xff]  ;;  %v864_v14 = vld [vmem:[%s2224_s16 + $0x1b0] sm:$0xff] }
  0xfa   : > { %v1486_v12 = vpack.c.bf16 %v865_v10, %v863_v9  ;;  %v867_v15 = vld [vmem:[%s2224_s16 + $0x1c8] sm:$0xff]  ;;  %v869_v16 = vld [vmem:[%s2224_s16 + $0x1d8] sm:$0xff]  ;;  %v549_v58 = vld [vmem:[%s2216_s0 + $0x198] sm:$0xff] }
  0xfb   : > { %1349 = vmatpush1.bf16.msra.mxu0 %v1348_v20  ;;  %v828_v20 = vld [vmem:[%s2224_s16 + $0x90] sm:$0xff]  ;;  %v524_v44 = vld [vmem:[%s2216_s0 + $0xd0] sm:$0xff] }
  0xfc   : > { %1351 = vmatprep.subr.bf16.mxu0 %v1350_v21  ;;  %v831_v21 = vld [vmem:[%s2224_s16 + $0xa8] sm:$0xff]  ;;  %1449 = vmatpush1.bf16.msra.mxu1 %v1448_v17  ;;  %v1452_v23 = vpack.c.bf16 %v828_v20, %v826_v19  ;;  %v1488_v17 = vpack.c.bf16 %v864_v14, %v862_v13  ;;  %v866_v19 = vld [vmem:[%s2224_s16 + $0x1c0] sm:$0xff]  ;;  %v868_v20 = vld [vmem:[%s2224_s16 + $0x1d0] sm:$0xff] }
  0xfd   : > { %1451 = vmatprep.subr.bf16.mxu1 %v1450_v18  ;;  %v1454_v24 = vpack.c.bf16 %v833_v22, %v831_v21  ;;  %v1490_v18 = vpack.c.bf16 %v869_v16, %v867_v15  ;;  %v500_v21 = vld [vmem:[%s2216_s0 + $0x10] sm:$0xff]  ;;  %v557_v0 = vld [vmem:[%s2216_s0 + $0x1d8] sm:$0xff] }
  0xfe   : > { %v504_v22 = vld [vmem:[%s2216_s0 + $0x30] sm:$0xff]  ;;  %v565_v10 = vld [vmem:[%s2216_s0 + $0x218] sm:$0xff] }
  0xff   : > { %1353 = vmatpush1.bf16.msra.mxu0 %v1352_v26  ;;  %v832_v26 = vld [vmem:[%s2224_s16 + $0xb0] sm:$0xff]  ;;  %v532_v50 = vld [vmem:[%s2216_s0 + $0x110] sm:$0xff] }
 0x100   : > { %1355 = vmatprep.subr.bf16.mxu0 %v1354_v27  ;;  %v835_v27 = vld [vmem:[%s2224_s16 + $0xc8] sm:$0xff]  ;;  %1453 = vmatpush1.bf16.msra.mxu1 %v1452_v23  ;;  %v1456_v29 = vpack.c.bf16 %v832_v26, %v830_v25  ;;  %v513_v25 = vld [vmem:[%s2216_s0 + $0x78] sm:$0xff] }
 0x101   : > { %1455 = vmatprep.subr.bf16.mxu1 %v1454_v24  ;;  %v1458_v30 = vpack.c.bf16 %v837_v28, %v835_v27  ;;  %v509_v24 = vld [vmem:[%s2216_s0 + $0x58] sm:$0xff]  ;;  %v1492_v27 = vpack.c.bf16 %v868_v20, %v866_v19  ;;  %v540_v56 = vld [vmem:[%s2216_s0 + $0x150] sm:$0xff] }
 0x102   : > { %v544_v57 = vld [vmem:[%s2216_s0 + $0x170] sm:$0xff]  ;;  %v573_v16 = vld [vmem:[%s2216_s0 + $0x258] sm:$0xff] }
 0x103   : > { %1357 = vmatpush1.bf16.msra.mxu0 %v1356_v32  ;;  %v836_v32 = vld [vmem:[%s2224_s16 + $0xd0] sm:$0xff]  ;;  %v548_v62 = vld [vmem:[%s2216_s0 + $0x190] sm:$0xff] }
 0x104   : > { %1359 = vmatprep.subr.bf16.mxu0 %v1358_v33  ;;  %v839_v33 = vld [vmem:[%s2224_s16 + $0xe8] sm:$0xff]  ;;  %1457 = vmatpush1.bf16.msra.mxu1 %v1456_v29  ;;  %v1460_v35 = vpack.c.bf16 %v836_v32, %v834_v31  ;;  %v1372_v29 = vpack.c.bf16 %v504_v22, %v500_v21  ;;  %v1374_v31 = vpack.c.bf16 %v513_v25, %v509_v24  ;;  %v581_v22 = vld [vmem:[%s2216_s0 + $0x298] sm:$0xff] }
 0x105   : > { %1459 = vmatprep.subr.bf16.mxu1 %v1458_v30  ;;  %v1462_v36 = vpack.c.bf16 %v841_v34, %v839_v33  ;;  %v508_v32 = vld [vmem:[%s2216_s0 + $0x50] sm:$0xff] }
 0x106   : > { %v512_v33 = vld [vmem:[%s2216_s0 + $0x70] sm:$0xff] }
 0x107   : > { %1361 = vmatpush1.bf16.msra.mxu0 %v1360_v38  ;;  %v840_v38 = vld [vmem:[%s2224_s16 + $0xf0] sm:$0xff]  ;;  %v552_v63 = vld [vmem:[%s2216_s0 + $0x1b0] sm:$0xff] }
 0x108   : > { %1363 = vmatprep.subr.bf16.mxu0 %v1362_v39  ;;  %v843_v39 = vld [vmem:[%s2224_s16 + $0x108] sm:$0xff]  ;;  %1461 = vmatpush1.bf16.msra.mxu1 %v1460_v35  ;;  %v1464_v41 = vpack.c.bf16 %v840_v38, %v838_v37  ;;  %v517_v35 = vld [vmem:[%s2216_s0 + $0x98] sm:$0xff]  ;;  %v1376_v38 = vpack.c.bf16 %v512_v33, %v508_v32 }
 0x109   : > { %1463 = vmatprep.subr.bf16.mxu1 %v1462_v36  ;;  %v521_v36 = vld [vmem:[%s2216_s0 + $0xb8] sm:$0xff]  ;;  %v556_v7 = vld [vmem:[%s2216_s0 + $0x1d0] sm:$0xff] }
 0x10a   : > { %v560_v9 = vld [vmem:[%s2216_s0 + $0x1f0] sm:$0xff] }
 0x10b   : > { %1365 = vmatpush1.bf16.msra.mxu0 %v1364_v42  ;;  %v1466_v42 = vpack.c.bf16 %v845_v40, %v843_v39  ;;  %v1378_v39 = vpack.c.bf16 %v521_v36, %v517_v35  ;;  %v516_v40 = vld [vmem:[%s2216_s0 + $0x90] sm:$0xff]  ;;  %v597_v35 = vld [vmem:[%s2216_s0 + $0x318] sm:$0xff] }
 0x10c   : > { %1367 = vmatprep.subr.bf16.mxu0 %v1366_v45  ;;  %v847_v45 = vld [vmem:[%s2224_s16 + $0x128] sm:$0xff]  ;;  %1465 = vmatpush1.bf16.msra.mxu1 %v1464_v41  ;;  %v601_v36 = vld [vmem:[%s2216_s0 + $0x338] sm:$0xff] }
 0x10d   : > { %1467 = vmatprep.subr.bf16.mxu1 %v1466_v42  ;;  %v520_v41 = vld [vmem:[%s2216_s0 + $0xb0] sm:$0xff]  ;;  %v529_v42 = vld [vmem:[%s2216_s0 + $0xf8] sm:$0xff] }
 0x10e   : > { %v564_v14 = vld [vmem:[%s2216_s0 + $0x210] sm:$0xff] }
 0x10f   : > { %1369 = vmatpush1.bf16.msra.mxu0 %v1368_v48  ;;  %v1470_v48 = vpack.c.bf16 %v849_v46, %v847_v45  ;;  %v528_v45 = vld [vmem:[%s2216_s0 + $0xf0] sm:$0xff]  ;;  %v533_v46 = vld [vmem:[%s2216_s0 + $0x118] sm:$0xff] }
 0x110   : > { %1371 = vmatprep.subr.bf16.mxu0 %v1370_v51  ;;  %v851_v51 = vld [vmem:[%s2224_s16 + $0x148] sm:$0xff]  ;;  %1469 = vmatpush1.bf16.msra.mxu1 %v1468_v47  ;;  %v537_v47 = vld [vmem:[%s2216_s0 + $0x138] sm:$0xff] }
 0x111   : > { %1471 = vmatprep.subr.bf16.mxu1 %v1470_v48  ;;  %v1474_v54 = vpack.c.bf16 %v853_v52, %v851_v51  ;;  %v1384_v48 = vpack.c.bf16 %v528_v45, %v524_v44  ;;  %v1386_v49 = vpack.c.bf16 %v537_v47, %v533_v46  ;;  %v536_v51 = vld [vmem:[%s2216_s0 + $0x130] sm:$0xff]  ;;  %v541_v52 = vld [vmem:[%s2216_s0 + $0x158] sm:$0xff] }
 0x112   : > { %v568_v15 = vld [vmem:[%s2216_s0 + $0x230] sm:$0xff]  ;;  %v613_v45 = vld [vmem:[%s2216_s0 + $0x398] sm:$0xff] }
 0x113   : > { %v572_v20 = vld [vmem:[%s2216_s0 + $0x250] sm:$0xff]  ;;  %v617_v46 = vld [vmem:[%s2216_s0 + $0x3b8] sm:$0xff] }
 0x114   : > { %1473 = vmatpush1.bf16.msra.mxu1 %v1472_v53  ;;  %v545_v53 = vld [vmem:[%s2216_s0 + $0x178] sm:$0xff]  ;;  %v576_v21 = vld [vmem:[%s2216_s0 + $0x270] sm:$0xff] }
 0x115   : > { %1475 = vmatprep.subr.bf16.mxu1 %v1474_v54  ;;  %v1388_v54 = vpack.c.bf16 %v536_v51, %v532_v50  ;;  %v1390_v55 = vpack.c.bf16 %v545_v53, %v541_v52  ;;  %v1408_v24 = vpack.c.bf16 %v576_v21, %v572_v20  ;;  %v588_v33 = vld [vmem:[%s2216_s0 + $0x2d0] sm:$0xff]  ;;  %v621_v51 = vld [vmem:[%s2216_s0 + $0x3d8] sm:$0xff] }
 0x116   : > { %v608_v44 = vld [vmem:[%s2216_s0 + $0x370] sm:$0xff]  ;;  %v625_v52 = vld [vmem:[%s2216_s0 + $0x3f8] sm:$0xff] }
 0x117   : > { %v616_v50 = vld [vmem:[%s2216_s0 + $0x3b0] sm:$0xff] }
 0x118   : > { %1477 = vmatpush1.bf16.msra.mxu1 %v1476_v59  ;;  %v553_v59 = vld [vmem:[%s2216_s0 + $0x1b8] sm:$0xff] }
 0x119   : > { %1479 = vmatprep.subr.bf16.mxu1 %v1478_v60  ;;  %v1392_v60 = vpack.c.bf16 %v544_v57, %v540_v56  ;;  %v1394_v61 = vpack.c.bf16 %v553_v59, %v549_v58  ;;  %v624_v56 = vld [vmem:[%s2216_s0 + $0x3f0] sm:$0xff]  ;;  %v873_v59 = vld [vmem:[%s2224_s16 + $0x1f8] sm:$0xff] }
 0x11a   : > { %v871_v58 = vld [vmem:[%s2224_s16 + $0x1e8] sm:$0xff] }
 0x11c   : > { %1481 = vmatpush1.bf16.msra.mxu1 %v1480_v1  ;;  %v561_v1 = vld [vmem:[%s2216_s0 + $0x1f8] sm:$0xff] }
 0x11d   : > { %1483 = vmatprep.subr.bf16.mxu1 %v1482_v2  ;;  %v1396_v2 = vpack.c.bf16 %v552_v63, %v548_v62  ;;  %v1398_v3 = vpack.c.bf16 %v561_v1, %v557_v0  ;;  %v872_v62 = vld [vmem:[%s2224_s16 + $0x1f0] sm:$0xff]  ;;  %v875_v0 = vld [vmem:[%s2224_s16 + $0x208] sm:$0xff]  ;;  %v877_v1 = vld [vmem:[%s2224_s16 + $0x218] sm:$0xff] }
 0x120   : > { %1485 = vmatpush1.bf16.msra.mxu1 %v1484_v11  ;;  %v569_v11 = vld [vmem:[%s2216_s0 + $0x238] sm:$0xff] }
 0x121   : > { %1487 = vmatprep.subr.bf16.mxu1 %v1486_v12  ;;  %v1400_v12 = vpack.c.bf16 %v560_v9, %v556_v7  ;;  %v1402_v13 = vpack.c.bf16 %v569_v11, %v565_v10 }
 0x124   : > { %1489 = vmatpush1.bf16.msra.mxu1 %v1488_v17  ;;  %v577_v17 = vld [vmem:[%s2216_s0 + $0x278] sm:$0xff] }
 0x125   : > { %1491 = vmatprep.subr.bf16.mxu1 %v1490_v18  ;;  %v1404_v18 = vpack.c.bf16 %v568_v15, %v564_v14  ;;  %v1406_v19 = vpack.c.bf16 %v577_v17, %v573_v16  ;;  %v874_v14 = vld [vmem:[%s2224_s16 + $0x200] sm:$0xff]  ;;  %v876_v15 = vld [vmem:[%s2224_s16 + $0x210] sm:$0xff]  ;;  %v879_v17 = vld [vmem:[%s2224_s16 + $0x228] sm:$0xff] }
 0x126   : > { %v1500_v20 = vpack.c.bf16 %v876_v15, %v874_v14  ;;  %v913_v14 = vld [vmem:[%s2224_s16 + $0x338] sm:$0xff] }
 0x128   : > { %1493 = vmatpush1.bf16.msra.mxu1 %v1492_v27  ;;  %v584_v27 = vld [vmem:[%s2216_s0 + $0x2b0] sm:$0xff] }
 0x1a5   : > { %v483_v23 = vpop.f32.mrb[0].mxu0 }
 0x1a6   : > { %v485_v26 = vpop.f32.mrb[1].mxu0  ;;  %v2376_v30 = vadd.f32 %v483_v23, %v2234_v6  ;;  %v585_v23 = vld [vmem:[%s2216_s0 + $0x2b8] sm:$0xff] }
 0x1a7   : > { %v495_v28 = vadd.f32 %v485_v26, %v2230_v4  ;;  %v1410_v25 = vpack.c.bf16 %v585_v23, %v581_v22  ;;  %v580_v26 = vld [vmem:[%s2216_s0 + $0x290] sm:$0xff] }
 0x1a9   : > { %v489_v34 = vpop.f32.mrb[2].mxu0  ;;  %712 = vmatprep.mubr.f32.mxu0 %v495_v28 }
 0x1aa   : > { %v2383_v37 = vadd.f32 %v489_v34, %v2238_v8  ;;  %v491_v4 = vpop.f32.mrb[3].mxu0  ;;  %713 = vmatmul.mubr.f32.vlgmr.msra.gmra.mrb[4].mxu0 %v2376_v30  ;;  %v525_v8 = vld [vmem:[%s2216_s0 + $0xd8] sm:$0xff]  ;;  %v592_v34 = vld [vmem:[%s2216_s0 + $0x2f0] sm:$0xff] }
 0x1ab   : > { %v2387_v6 = vadd.f32 %v491_v4, %v2232_v5  ;;  %1373 = vmatpush1.bf16.msra.mxu0 %v1372_v29  ;;  %v1380_v5 = vpack.c.bf16 %v520_v41, %v516_v40  ;;  %v1382_v43 = vpack.c.bf16 %v529_v42, %v525_v8  ;;  %v593_v29 = vld [vmem:[%s2216_s0 + $0x2f8] sm:$0xff]  ;;  %v1416_v4 = vpack.c.bf16 %v592_v34, %v588_v33  ;;  %v600_v40 = vld [vmem:[%s2216_s0 + $0x330] sm:$0xff] }
 0x1ac   : > { %1375 = vmatprep.subr.bf16.mxu0 %v1374_v31  ;;  %v1412_v31 = vpack.c.bf16 %v584_v27, %v580_v26  ;;  %v605_v41 = vld [vmem:[%s2216_s0 + $0x358] sm:$0xff] }
 0x1ad   : > { %718 = vmatprep.mubr.f32.mxu0 %v2387_v6  ;;  %v609_v8 = vld [vmem:[%s2216_s0 + $0x378] sm:$0xff] }
 0x1ae   : > { %719 = vmatmul.mubr.f32.gmra.mrb[6].mxu0 %v2383_v37 }
 0x1af   : > { %1377 = vmatpush1.bf16.msra.mxu0 %v1376_v38  ;;  %789 = vmatprep.mubr.f32.mxu0 %v495_v28  ;;  %v589_v28 = vld [vmem:[%s2216_s0 + $0x2d8] sm:$0xff]  ;;  %v1418_v38 = vpack.c.bf16 %v601_v36, %v597_v35  ;;  %v882_v36 = vld [vmem:[%s2224_s16 + $0x240] sm:$0xff] }
 0x1b0   : > { %1379 = vmatprep.subr.bf16.mxu0 %v1378_v39  ;;  %v1414_v32 = vpack.c.bf16 %v593_v29, %v589_v28  ;;  %v596_v39 = vld [vmem:[%s2216_s0 + $0x310] sm:$0xff]  ;;  %v885_v29 = vld [vmem:[%s2224_s16 + $0x258] sm:$0xff] }
 0x1b1   : > { %v1420_v42 = vpack.c.bf16 %v600_v40, %v596_v39  ;;  %v883_v28 = vld [vmem:[%s2224_s16 + $0x248] sm:$0xff]  ;;  %v889_v39 = vld [vmem:[%s2224_s16 + $0x278] sm:$0xff] }
 0x1b2   : > { %v1506_v35 = vpack.c.bf16 %v885_v29, %v883_v28  ;;  %v918_v29 = vld [vmem:[%s2224_s16 + $0x360] sm:$0xff] }
 0x1b3   : > { %1381 = vmatpush1.bf16.msra.mxu0 %v1380_v5  ;;  %v1422_v5 = vpack.c.bf16 %v609_v8, %v605_v41  ;;  %v886_v8 = vld [vmem:[%s2224_s16 + $0x260] sm:$0xff] }
 0x1b4   : > { %1383 = vmatprep.subr.bf16.mxu0 %v1382_v43  ;;  %v604_v43 = vld [vmem:[%s2216_s0 + $0x350] sm:$0xff] }
 0x1b5   : > { %v1424_v47 = vpack.c.bf16 %v608_v44, %v604_v43  ;;  %v893_v43 = vld [vmem:[%s2224_s16 + $0x298] sm:$0xff] }
 0x1b7   : > { %1385 = vmatpush1.bf16.msra.mxu0 %v1384_v48  ;;  %v1426_v48 = vpack.c.bf16 %v617_v46, %v613_v45  ;;  %v890_v46 = vld [vmem:[%s2224_s16 + $0x280] sm:$0xff] }
 0x1b8   : > { %1387 = vmatprep.subr.bf16.mxu0 %v1386_v49  ;;  %v612_v49 = vld [vmem:[%s2216_s0 + $0x390] sm:$0xff] }
 0x1b9   : > { %v1428_v53 = vpack.c.bf16 %v616_v50, %v612_v49  ;;  %v897_v49 = vld [vmem:[%s2224_s16 + $0x2b8] sm:$0xff] }
 0x1bb   : > { %1389 = vmatpush1.bf16.msra.mxu0 %v1388_v54  ;;  %v1430_v54 = vpack.c.bf16 %v625_v52, %v621_v51  ;;  %v894_v52 = vld [vmem:[%s2224_s16 + $0x2a0] sm:$0xff] }
 0x1bc   : > { %1391 = vmatprep.subr.bf16.mxu0 %v1390_v55  ;;  %v620_v55 = vld [vmem:[%s2216_s0 + $0x3d0] sm:$0xff] }
 0x1bd   : > { %v1432_v57 = vpack.c.bf16 %v624_v56, %v620_v55  ;;  %v901_v55 = vld [vmem:[%s2224_s16 + $0x2d8] sm:$0xff] }
 0x1bf   : > { %1393 = vmatpush1.bf16.msra.mxu0 %v1392_v60  ;;  %v1494_v60 = vpack.c.bf16 %v873_v59, %v871_v58  ;;  %v898_v58 = vld [vmem:[%s2224_s16 + $0x2c0] sm:$0xff]  ;;  %v900_v59 = vld [vmem:[%s2224_s16 + $0x2d0] sm:$0xff] }
 0x1c0   : > { %1395 = vmatprep.subr.bf16.mxu0 %v1394_v61  ;;  %v870_v61 = vld [vmem:[%s2224_s16 + $0x1e0] sm:$0xff] }
 0x1c1   : > { %v1496_v63 = vpack.c.bf16 %v872_v62, %v870_v61  ;;  %1495 = vmatprep.subr.bf16.mxu1 %v1494_v60  ;;  %v903_v60 = vld [vmem:[%s2224_s16 + $0x2e8] sm:$0xff]  ;;  %v905_v61 = vld [vmem:[%s2224_s16 + $0x2f8] sm:$0xff]  ;;  %v1524_v62 = vpack.c.bf16 %v900_v59, %v898_v58 }
 0x1c3   : > { %1397 = vmatpush1.bf16.msra.mxu0 %v1396_v2  ;;  %1497 = vmatpush1.bf16.msra.mxu1 %v1496_v63  ;;  %v1498_v2 = vpack.c.bf16 %v877_v1, %v875_v0  ;;  %v1526_v63 = vpack.c.bf16 %v905_v61, %v903_v60  ;;  %v902_v0 = vld [vmem:[%s2224_s16 + $0x2e0] sm:$0xff]  ;;  %v904_v1 = vld [vmem:[%s2224_s16 + $0x2f0] sm:$0xff] }
 0x1c4   : > { %1399 = vmatprep.subr.bf16.mxu0 %v1398_v3  ;;  %v2458_v3 = vld [vmem:[%s2222_s15] sm:$0xf] }
 0x1c5   : > { %1499 = vmatprep.subr.bf16.mxu1 %v1498_v2  ;;  %v907_v2 = vld [vmem:[%s2224_s16 + $0x308] sm:$0xff] }
 0x1c7   : > { %1401 = vmatpush1.bf16.msra.mxu0 %v1400_v12 }
 0x1c8   : > { %1403 = vmatprep.subr.bf16.mxu0 %v1402_v13 }
 0x1cb   : > { %1405 = vmatpush1.bf16.msra.mxu0 %v1404_v18  ;;  %v881_v18 = vld [vmem:[%s2224_s16 + $0x238] sm:$0xff] }
 0x1cc   : > { %1407 = vmatprep.subr.bf16.mxu0 %v1406_v19  ;;  %v1502_v23 = vpack.c.bf16 %v881_v18, %v879_v17  ;;  %v910_v17 = vld [vmem:[%s2224_s16 + $0x320] sm:$0xff]  ;;  %v912_v18 = vld [vmem:[%s2224_s16 + $0x330] sm:$0xff] }
 0x1cf   : > { %1409 = vmatpush1.bf16.msra.mxu0 %v1408_v24  ;;  %v878_v24 = vld [vmem:[%s2224_s16 + $0x220] sm:$0xff] }
 0x1d0   : > { %1411 = vmatprep.subr.bf16.mxu0 %v1410_v25  ;;  %v880_v25 = vld [vmem:[%s2224_s16 + $0x230] sm:$0xff] }
 0x1d1   : > { %v1504_v33 = vpack.c.bf16 %v880_v25, %v878_v24  ;;  %v916_v24 = vld [vmem:[%s2224_s16 + $0x350] sm:$0xff]  ;;  %v919_v25 = vld [vmem:[%s2224_s16 + $0x368] sm:$0xff] }
 0x1d3   : > { %1413 = vmatpush1.bf16.msra.mxu0 %v1412_v31 }
 0x1d4   : > { %1415 = vmatprep.subr.bf16.mxu0 %v1414_v32 }
 0x1d7   : > { %1417 = vmatpush1.bf16.msra.mxu0 %v1416_v4  ;;  %v884_v4 = vld [vmem:[%s2224_s16 + $0x250] sm:$0xff] }
 0x1d8   : > { %1419 = vmatprep.subr.bf16.mxu0 %v1418_v38  ;;  %v887_v38 = vld [vmem:[%s2224_s16 + $0x268] sm:$0xff]  ;;  %v1508_v40 = vpack.c.bf16 %v884_v4, %v882_v36  ;;  %v922_v36 = vld [vmem:[%s2224_s16 + $0x380] sm:$0xff]  ;;  %v924_v4 = vld [vmem:[%s2224_s16 + $0x390] sm:$0xff] }
 0x1d9   : > { %v1510_v41 = vpack.c.bf16 %v889_v39, %v887_v38  ;;  %v927_v38 = vld [vmem:[%s2224_s16 + $0x3a8] sm:$0xff]  ;;  %v929_v39 = vld [vmem:[%s2224_s16 + $0x3b8] sm:$0xff] }
 0x1db   : > { %1421 = vmatpush1.bf16.msra.mxu0 %v1420_v42  ;;  %v888_v42 = vld [vmem:[%s2224_s16 + $0x270] sm:$0xff] }
 0x1dc   : > { %1423 = vmatprep.subr.bf16.mxu0 %v1422_v5  ;;  %v891_v5 = vld [vmem:[%s2224_s16 + $0x288] sm:$0xff]  ;;  %v1512_v44 = vpack.c.bf16 %v888_v42, %v886_v8  ;;  %v926_v8 = vld [vmem:[%s2224_s16 + $0x3a0] sm:$0xff]  ;;  %v928_v42 = vld [vmem:[%s2224_s16 + $0x3b0] sm:$0xff] }
 0x1dd   : > { %v1514_v45 = vpack.c.bf16 %v893_v43, %v891_v5  ;;  %v931_v5 = vld [vmem:[%s2224_s16 + $0x3c8] sm:$0xff]  ;;  %v933_v43 = vld [vmem:[%s2224_s16 + $0x3d8] sm:$0xff] }
 0x1df   : > { %1425 = vmatpush1.bf16.msra.mxu0 %v1424_v47  ;;  %v892_v47 = vld [vmem:[%s2224_s16 + $0x290] sm:$0xff] }
 0x1e0   : > { %1427 = vmatprep.subr.bf16.mxu0 %v1426_v48  ;;  %v895_v48 = vld [vmem:[%s2224_s16 + $0x2a8] sm:$0xff]  ;;  %v1516_v50 = vpack.c.bf16 %v892_v47, %v890_v46  ;;  %v930_v47 = vld [vmem:[%s2224_s16 + $0x3c0] sm:$0xff] }
 0x1e1   : > { %v1518_v51 = vpack.c.bf16 %v897_v49, %v895_v48  ;;  %v932_v48 = vld [vmem:[%s2224_s16 + $0x3d0] sm:$0xff] }
 0x1e3   : > { %1429 = vmatpush1.bf16.msra.mxu0 %v1428_v53  ;;  %v896_v53 = vld [vmem:[%s2224_s16 + $0x2b0] sm:$0xff] }
 0x1e4   : > { %1431 = vmatprep.subr.bf16.mxu0 %v1430_v54  ;;  %v899_v54 = vld [vmem:[%s2224_s16 + $0x2c8] sm:$0xff]  ;;  %v1520_v56 = vpack.c.bf16 %v896_v53, %v894_v52  ;;  %v1556_v52 = vpack.c.bf16 %v932_v48, %v930_v47 }
 0x1e7   : > { %1433 = vmatpush1.bf16.msra.mxu0 %v1432_v57  ;;  %v1522_v57 = vpack.c.bf16 %v901_v55, %v899_v54  ;;  %v934_v55 = vld [vmem:[%s2224_s16 + $0x3e0] sm:$0xff] }
 0x1ea   : > { %790 = vmatmul.mubr.f32.vlgmr.msra.gmra.mrb[8].mxu0 %v2376_v30  ;;  %v628_v30 = vlaneseq }
 0x1eb   : > { %795 = vmatprep.mubr.f32.mxu0 %v2387_v6 }
 0x1ec   : > { %v2454_v6 = vshrl.u32 %v628_v30, 7  ;;  %v909_v30 = vld [vmem:[%s2224_s16 + $0x318] sm:$0xff] }
 0x1ee   : > { %796 = vmatmul.mubr.f32.gmra.mrb[10].mxu0 %v2383_v37  ;;  %v630_v37 = vsub.s32 0, %v2454_v6  ;;  %v634_v7 = vsub.s32 1, %v2454_v6  ;;  %v638_v46 = vsub.s32 2, %v2454_v6  ;;  %v642_v49 = vsub.s32 3, %v2454_v6 }
 0x1f0   : > { %v631_v9 = vrot.slane %v2458_v3, %v630_v37  ;;  %v635_v10 = vrot.slane %v2458_v3, %v634_v7  ;;  %v639_v53 = vrot.slane %v2458_v3, %v638_v46 }
 0x27d   : > { %v714_v11 = vpop.f32.mrb[4].mxu0 }
 0x27e   : > { %v715_v12 = vadd.f32 %v714_v11, %v631_v9  ;;  %v716_v13 = vpop.f32.mrb[5].mxu0  ;;  %v906_v11 = vld [vmem:[%s2224_s16 + $0x300] sm:$0xff] }
 0x27f   : > { %v717_v16 = vadd.f32 %v716_v13, %v635_v10  ;;  %v911_v13 = vld [vmem:[%s2224_s16 + $0x328] sm:$0xff] }
 0x280   : > { %v802_v22 = vmax.f32 %v715_v12, 0.0  ;;  %v908_v12 = vld [vmem:[%s2224_s16 + $0x310] sm:$0xff] }
 0x281   : > { %v803_v19 = vmax.f32 %v717_v16, 0.0  ;;  %v720_v21 = vpop.f32.mrb[6].mxu0  ;;  %v1532_v15 = vpack.c.bf16 %v908_v12, %v906_v11  ;;  %v1534_v16 = vpack.c.bf16 %v913_v14, %v911_v13  ;;  %v938_v11 = vld [vmem:[%s2226_s19] sm:$0x3]  ;;  %v1110_v14 = vstv %s1109_s7 }
 0x282   : > { %v721_v26 = vadd.f32 %v720_v21, %v631_v9  ;;  %v722_v27 = vpop.f32.mrb[7].mxu0  ;;  %v1528_v9 = vpack.c.bf16 %v904_v1, %v902_v0  ;;  %v1536_v21 = vpack.c.bf16 %v912_v18, %v910_v17  ;;  %v943_v12 = vrot.slane %v938_v11, %v630_v37 }
 0x283   : > { %1014 = vmatprep.mubr.f32.mxu1 %v803_v19  ;;  %v723_v31 = vadd.f32 %v722_v27, %v635_v10  ;;  %v1530_v10 = vpack.c.bf16 %v909_v30, %v907_v2  ;;  %v915_v19 = vld [vmem:[%s2224_s16 + $0x348] sm:$0xff]  ;;  %v947_v13 = vrot.slane %v938_v11, %v634_v7  ;;  %vm2539_vm1 = vcmp.eq.s32.totalorder %v1110_v14, 1 }
 0x284   : > { %1015 = vmatmul.mubr.f32.vlgmr.msra.gmra.mrb[0].mxu1 %v802_v22  ;;  %v806_v32 = vmax.f32 %v721_v26, 0.0  ;;  %v921_v26 = vld [vmem:[%s2224_s16 + $0x378] sm:$0xff] }
 0x285   : > { %1501 = vmatpush1.bf16.msra.mxu1 %v1500_v20  ;;  %v807_v34 = vmax.f32 %v723_v31, 0.0  ;;  %v917_v20 = vld [vmem:[%s2224_s16 + $0x358] sm:$0xff]  ;;  %v1542_v28 = vpack.c.bf16 %v921_v26, %v919_v25  ;;  %v920_v31 = vld [vmem:[%s2224_s16 + $0x370] sm:$0xff] }
 0x286   : > { %1503 = vmatprep.subr.bf16.mxu1 %v1502_v23  ;;  %v1538_v22 = vpack.c.bf16 %v917_v20, %v915_v19  ;;  %v914_v23 = vld [vmem:[%s2224_s16 + $0x340] sm:$0xff] }
 0x287   : > { %1020 = vmatprep.mubr.f32.mxu1 %v807_v34  ;;  %v1540_v27 = vpack.c.bf16 %v916_v24, %v914_v23  ;;  %v1544_v34 = vpack.c.bf16 %v920_v31, %v918_v29 }
 0x288   : > { %1021 = vmatmul.mubr.f32.gmra.mrb[2].mxu1 %v806_v32  ;;  %v923_v32 = vld [vmem:[%s2224_s16 + $0x388] sm:$0xff] }
 0x289   : > { %1505 = vmatpush1.bf16.msra.mxu1 %v1504_v33  ;;  %v925_v33 = vld [vmem:[%s2224_s16 + $0x398] sm:$0xff] }
 0x28a   : > { %1507 = vmatprep.subr.bf16.mxu1 %v1506_v35  ;;  %v1546_v35 = vpack.c.bf16 %v925_v33, %v923_v32 }
 0x28d   : > { %1509 = vmatpush1.bf16.msra.mxu1 %v1508_v40  ;;  %v1548_v40 = vpack.c.bf16 %v924_v4, %v922_v36 }
 0x28e   : > { %1511 = vmatprep.subr.bf16.mxu1 %v1510_v41  ;;  %v1550_v41 = vpack.c.bf16 %v929_v39, %v927_v38 }
 0x291   : > { %1513 = vmatpush1.bf16.msra.mxu1 %v1512_v44  ;;  %v1552_v44 = vpack.c.bf16 %v928_v42, %v926_v8 }
 0x292   : > { %1515 = vmatprep.subr.bf16.mxu1 %v1514_v45  ;;  %v1554_v45 = vpack.c.bf16 %v933_v43, %v931_v5 }
 0x295   : > { %1517 = vmatpush1.bf16.msra.mxu1 %v1516_v50  ;;  %v935_v50 = vld [vmem:[%s2224_s16 + $0x3e8] sm:$0xff] }
 0x296   : > { %1519 = vmatprep.subr.bf16.mxu1 %v1518_v51  ;;  %v937_v51 = vld [vmem:[%s2224_s16 + $0x3f8] sm:$0xff] }
 0x297   : > { %v1558_v54 = vpack.c.bf16 %v937_v51, %v935_v50 }
 0x299   : > { %1521 = vmatpush1.bf16.msra.mxu1 %v1520_v56  ;;  %v936_v56 = vld [vmem:[%s2224_s16 + $0x3f0] sm:$0xff] }
 0x29a   : > { %1523 = vmatprep.subr.bf16.mxu1 %v1522_v57  ;;  %v643_v57 = vrot.slane %v2458_v3, %v642_v49  ;;  %v1560_v59 = vpack.c.bf16 %v936_v56, %v934_v55 }
 0x29d   : > { %1525 = vmatpush1.bf16.msra.mxu1 %v1524_v62 }
 0x29e   : > { %1527 = vmatprep.subr.bf16.mxu1 %v1526_v63 }
 0x2a1   : > { %1529 = vmatpush1.bf16.msra.mxu1 %v1528_v9 }
 0x2a2   : > { %1531 = vmatprep.subr.bf16.mxu1 %v1530_v10 }
 0x2a5   : > { %1533 = vmatpush1.bf16.msra.mxu1 %v1532_v15 }
 0x2a6   : > { %1535 = vmatprep.subr.bf16.mxu1 %v1534_v16 }
 0x2a9   : > { %1537 = vmatpush1.bf16.msra.mxu1 %v1536_v21 }
 0x2aa   : > { %1539 = vmatprep.subr.bf16.mxu1 %v1538_v22 }
 0x2ad   : > { %1541 = vmatpush1.bf16.msra.mxu1 %v1540_v27 }
 0x2ae   : > { %1543 = vmatprep.subr.bf16.mxu1 %v1542_v28 }
 0x2b1   : > { %1545 = vmatpush1.bf16.msra.mxu1 %v1544_v34 }
 0x2b2   : > { %1547 = vmatprep.subr.bf16.mxu1 %v1546_v35 }
 0x2b5   : > { %1549 = vmatpush1.bf16.msra.mxu1 %v1548_v40 }
 0x2b6   : > { %1551 = vmatprep.subr.bf16.mxu1 %v1550_v41 }
 0x2b9   : > { %1553 = vmatpush1.bf16.msra.mxu1 %v1552_v44 }
 0x2ba   : > { %1555 = vmatprep.subr.bf16.mxu1 %v1554_v45 }
 0x2bd   : > { %v791_v58 = vpop.f32.mrb[8].mxu0  ;;  %1557 = vmatpush1.bf16.msra.mxu1 %v1556_v52 }
 0x2be   : > { %v792_v60 = vadd.f32 %v791_v58, %v639_v53  ;;  %v793_v61 = vpop.f32.mrb[9].mxu0  ;;  %1559 = vmatprep.subr.bf16.mxu1 %v1558_v54 }
 0x2bf   : > { %v794_v62 = vadd.f32 %v793_v61, %v643_v57 }
 0x2c0   : > { %v804_v1 = vmax.f32 %v792_v60, 0.0 }
 0x2c1   : > { %v805_v63 = vmax.f32 %v794_v62, 0.0  ;;  %v797_v0 = vpop.f32.mrb[10].mxu0  ;;  %1561 = vmatpush1.bf16.msra.mxu1 %v1560_v59 }
 0x2c2   : > { %v798_v2 = vadd.f32 %v797_v0, %v639_v53  ;;  %v799_v30 = vpop.f32.mrb[11].mxu0 }
 0x2c3   : > { %v800_v9 = vadd.f32 %v799_v30, %v643_v57  ;;  %1091 = vmatprep.mubr.f32.mxu1 %v805_v63 }
 0x2c4   : > { %1092 = vmatmul.mubr.f32.vlgmr.msra.gmra.mrb[0].mxu1 %v804_v1  ;;  %v808_v3 = vmax.f32 %v798_v2, 0.0 }
 0x2c5   : > { %v809_v10 = vmax.f32 %v800_v9, 0.0 }
 0x2c7   : > { %1097 = vmatprep.mubr.f32.mxu1 %v809_v10 }
 0x2c8   : > { %1098 = vmatmul.mubr.f32.gmra.mrb[2].mxu1 %v808_v3 }
 0x397   : > { %v1093_v15 = vpop.f32.mrb[0].mxu1 }
 0x398   : > { %v1562_v16 = vadd.f32 %v1093_v15, %v943_v12  ;;  %v1095_v17 = vpop.f32.mrb[1].mxu1 }
 0x399   : > { %v1563_v19 = vadd.f32 %v1095_v17, %v947_v13 }
 0x39a   : > { %v1105_v20 = vmax.f32 %v1562_v16, 0.0 }
 0x39b   : > { %v1106_v21 = vmax.f32 %v1563_v19, 0.0  ;;  %v1099_v22 = vpop.f32.mrb[2].mxu1 }
 0x39c   : > { %v1112_v23 = vsel %vm2539_vm1, %v1105_v20, %v1562_v16  ;;  %v1564_v24 = vadd.f32 %v1099_v22, %v943_v12  ;;  %v1101_v37 = vpop.f32.mrb[3].mxu1  ;;  %1123 = sbr.rel (%p1293_p13) target bundleno = 931 (0x3a3), region = 76 }
 0x39d   : > { %1116 = vst [vmem:[#allocation2] sm:$0xff] %v1112_v23  ;;  %v1113_v6 = vsel %vm2539_vm1, %v1106_v21, %v1563_v19  ;;  %v1565_v7 = vadd.f32 %v1101_v37, %v947_v13  ;;  %1124 = vst [vmem:[#allocation12] sm:$0xff] (!%p1293_p13), %v1112_v23 }
 0x39e   : > { %1117 = vst [vmem:[#allocation2 + $0x8] sm:$0xff] %v1113_v6  ;;  %v1107_v25 = vmax.f32 %v1564_v24, 0.0  ;;  %1125 = vst [vmem:[#allocation12 + $0x8] sm:$0xff] (!%p1293_p13), %v1113_v6 }
 0x39f   : > { %v1108_v26 = vmax.f32 %v1565_v7, 0.0 }
 0x3a0   : > { %v1114_v27 = vsel %vm2539_vm1, %v1107_v25, %v1564_v24 }
 0x3a1   : > { %1118 = vst [vmem:[#allocation2 + $0x10] sm:$0xff] %v1114_v27  ;;  %v1115_v28 = vsel %vm2539_vm1, %v1108_v26, %v1565_v7  ;;  %1126 = vst [vmem:[#allocation12 + $0x10] sm:$0xff] (!%p1293_p13), %v1114_v27 }
 0x3a2   : > { %1119 = vst [vmem:[#allocation2 + $0x18] sm:$0xff] %v1115_v28  ;;  %1127 = vst [vmem:[#allocation12 + $0x18] sm:$0xff] (!%p1293_p13), %v1115_v28 }
 0x3a3 PF: > { %p1615_p7 = scmp.eq.s32.totalorder %s1981_s25, 5  ;;  %s1924_s11 = smov [#allocation12]  }
 0x3a4   : > { %s1134_s12 = sshll.u32 %s1924_s11, 4  ;;  %s1135_s12 = int_to_ptr.vmem [resolvable:$true] %s1134_s12 }
 0x3a5   : > { %s1837_s21 = scalar_lea.vmem %s1135_s12, 512  ;;  %p1844_p5 = scmp.lt.s32.totalorder %s1135_s12, %s1135_s12 }
 0x3a6   : > { %p1838_p9 = scmp.ne.s32.totalorder %s1135_s12, %s1837_s21  ;;  %p1845_p1 = scmp.lt.s32.totalorder %s1837_s21, %s1837_s21 }
 0x3a8   : > { %p1839_p10 = pnand %p1838_p9, %p1615_p7  ;;  %p1846_p6 = por %p1845_p1, %p1844_p5 }
 0x3aa   : > { %p1840_p3 = pneg %p1839_p10 }
 0x3ac   : > { %p1847_p12 = pnand %p1846_p6, %p1840_p3 }
 0x3ae   : > { %1850 = shalt.err (!%p1847_p12)
}
 0x3af   : > { %s1851_s9 = scalar_lea.hbm %s2594_s6, 512 }
 0x3b0   : > { %p1852_p2 = scmp.ne.s32.totalorder %s2594_s6, %s1851_s9  ;;  %p1857_p0 = scmp.lt.u32.totalorder %s1851_s9, %s2594_s6 }
 0x3b2   : > { %p1853_p4 = pnand %p1852_p2, %p1615_p7 }
 0x3b4   : > { %p1854_p8 = pneg %p1853_p4 }
 0x3b6   : > { %p1859_p11 = pnand %p1857_p0, %p1854_p8 }
 0x3b8   : > { %1862 = shalt.err (!%p1859_p11)
}
 0x3b9   : > { %s1925_s14 = smov 256   ;;  %s1926_s29 = smov 16  }
 0x3ba   : > { %1587 = dma.vmem_to_hbm [thread:$0]  (%p1615_p7), %s1135_s12, 512, %s2594_s6, [#allocation5], %s1925_s14, %s1925_s14, %s1926_s29  }
 0x3bb   : > { %1892 = dma.done.wait (%p1615_p7), [#allocation5], 512  }
 0x3bc   : > { %1894 = vsyncadd (%p1615_p7), [#allocation5], 4294966784 }
 0x3bd PF: > { %s2635_s0 = sld [smem:[#allocation17_spill]]  ;;  %p16_p13 = scmp.ge.s32.totalorder %s1984_s26, 8  }
 0x3be   : > { %s2636_s21 = smov %s1901_s22  ;;  %s2637_s22 = smov %s1905_s23 }
 0x3bf   : > { %s2639_s24 = smov %s1984_s26  ;;  %18 = sbr.rel (!%p16_p13) target bundleno = 6 (0x6), region = 129 }
 0x3c3   : > { %s2638_s23 = smov %s2635_s0 }
 0x3c6   :  { %1150 = vsyncpa [#allocation4], 1 }
 0x3c7   :  { %1152 = vsyncpa [#allocation4 + $0x1], 1 }
 0x3c8   :  { %1153 = vsyncpa [#allocation7], 1 }
 0x3c9   :  { %1154 = vsyncpa [#allocation5], 1 }
 0x3ca   :  { %1156 = vsyncpa [#allocation5 + $0x1], 1 }

</bundles_post_ra>
